<compile_context>
chip_gen: v7x
topology: tpu7x:2x2x1
jax: 0.10.0
libtpu: 0.0.40
codegen_flags: <defaults>
</compile_context>

<pallas_src>
import jax
import jax.numpy as jnp
from jax.experimental import pallas as pl
from jax.experimental.pallas import tpu as pltpu

_EPS = 1e-5


def _ln_body(x_ref, w_ref, b_ref, o_ref):
    # x_ref/o_ref: (C, TH, TW);  w_ref/b_ref: (C, 1, 1)  (b_ref may be None)
    x = x_ref[...].astype(jnp.float32)
    c = x.shape[0]
    inv_c = 1.0 / float(c)
    s1 = jnp.sum(x, axis=0, keepdims=True)          # (1, TH, TW)
    s2 = jnp.sum(x * x, axis=0, keepdims=True)      # (1, TH, TW)
    mu = s1 * inv_c
    var = jnp.maximum(s2 * inv_c - mu * mu, 0.0)    # population variance
    inv = jax.lax.rsqrt(var + _EPS)
    w = w_ref[...].astype(jnp.float32)              # (C, 1, 1) broadcasts
    if b_ref is None:
        y = (x * inv) * w                           # BiasFree: no mean subtraction
    else:
        b = b_ref[...].astype(jnp.float32)
        y = (x - mu) * inv * w + b
    o_ref[...] = y.astype(o_ref.dtype)


def _ln_kernel_withbias(x_ref, w_ref, b_ref, o_ref):
    _ln_body(x_ref, w_ref, b_ref, o_ref)


def _ln_kernel_biasfree(x_ref, w_ref, o_ref):
    _ln_body(x_ref, w_ref, None, o_ref)


def _choose_spatial_tile(C, H, W, itemsize, budget_bytes):
    """Pick (TH, TW): full dims when they fit, else (sublane, lane) multiples."""
    lane_q = 128
    sub_q = 8 * max(1, 4 // itemsize)       # 8 for f32, 16 for bf16, 32 for int8
    # Working set per grid step ~= 2 buffers x (in + out) x C*TH*TW*itemsize.
    max_hw = max(budget_bytes // (4 * C * itemsize), sub_q * lane_q)

    # Lane (W) tile: prefer full W (always legal); else a multiple of 128.
    if W * sub_q <= max_hw:
        tw = W
    else:
        tw = max(lane_q, (max_hw // (sub_q * lane_q)) * lane_q)
        tw = min(tw, pl.cdiv(W, lane_q) * lane_q)

    # Sublane (H) tile: prefer full H; else a multiple of the sublane quantum.
    if H * tw <= max_hw:
        th = H
    else:
        th = max(sub_q, ((max_hw // tw) // sub_q) * sub_q)
        th = min(th, pl.cdiv(H, sub_q) * sub_q)
    return th, tw


def layernorm_nchw(x, weight, bias=None, *, vmem_budget_bytes=8 << 20):
    """Channel LayerNorm over an NCHW tensor (reduction over axis 1)."""
    B, C, H, W = x.shape
    itemsize = jnp.dtype(x.dtype).itemsize
    th, tw = _choose_spatial_tile(C, H, W, itemsize, vmem_budget_bytes)
    grid = (B, pl.cdiv(H, th), pl.cdiv(W, tw))

    # Batch dim squeezed out of the kernel view; spatial tail blocks are handled
    # by cdiv grid (OOB reads feed only OOB positions, OOB writes are masked).
    x_spec = pl.BlockSpec((None, C, th, tw), lambda b, i, j: (b, 0, i, j))
    p_spec = pl.BlockSpec((C, 1, 1), lambda b, i, j: (0, 0, 0))

    w3 = weight.reshape(C, 1, 1)
    if bias is None:
        kernel = _ln_kernel_biasfree
        in_specs = [x_spec, p_spec]
        args = (x, w3)
    else:
        kernel = _ln_kernel_withbias
        in_specs = [x_spec, p_spec, p_spec]
        args = (x, w3, bias.reshape(C, 1, 1))

    return pl.pallas_call(
        kernel,
        out_shape=jax.ShapeDtypeStruct((B, C, H, W), x.dtype),
        grid_spec=pltpu.PrefetchScalarGridSpec(
            num_scalar_prefetch=0,
            grid=grid,
            in_specs=in_specs,
            out_specs=x_spec,
        ),
        compiler_params=pltpu.CompilerParams(
            dimension_semantics=("parallel", "parallel", "parallel"),
        ),
    )(*args)


class LayerNorm:
    """JAX/Pallas port of mfnet.LayerNorm (channel LayerNorm on NCHW maps)."""

    def __init__(self, dim: int, LayerNorm_type: str):
        self.dim = dim
        self.bias_free = (LayerNorm_type == "BiasFree")
        self.weight = jnp.ones((dim,), dtype=jnp.float32)
        self.bias = None if self.bias_free else jnp.zeros((dim,), dtype=jnp.float32)

    def __call__(self, x):
        B, C, H, W = x.shape
        assert C == self.dim
        return layernorm_nchw(x, self.weight, self.bias)


def _reference(x, weight, bias, bias_free):
    # Pure-JAX reference of the PyTorch forward (for sanity checking only).
    xt = jnp.transpose(x, (0, 2, 3, 1)).astype(jnp.float32)  # (B,H,W,C)
    mu = jnp.mean(xt, axis=-1, keepdims=True)
    var = jnp.mean((xt - mu) ** 2, axis=-1, keepdims=True)
    if bias_free:
        y = xt / jnp.sqrt(var + _EPS) * weight
    else:
        y = (xt - mu) / jnp.sqrt(var + _EPS) * weight + bias
    return jnp.transpose(y, (0, 3, 1, 2)).astype(x.dtype)


if __name__ == "__main__":
    key = jax.random.PRNGKey(0)
    k0, k1 = jax.random.split(key)
    ok = True

    # Small shape matching the module's forward (NCHW).
    B, C, H, W = 2, 32, 16, 16
    x = jax.random.normal(k0, (B, C, H, W), dtype=jnp.float32)

    for ln_type in ("WithBias", "BiasFree"):
        ln = LayerNorm(C, ln_type)
        # Non-trivial affine params so the check is meaningful.
        ln.weight = 1.0 + 0.1 * jax.random.normal(k1, (C,), dtype=jnp.float32)
        if not ln.bias_free:
            ln.bias = 0.05 * jax.random.normal(k1, (C,), dtype=jnp.float32)
        y = jax.block_until_ready(ln(x))
        ref = _reference(x, ln.weight, ln.bias, ln.bias_free)
        if not jnp.allclose(y, ref, atol=1e-4, rtol=1e-4):
            ok = False

    # Exercise the spatially tiled path (TH=8, TW=128 blocks) with a tiny budget.
    B2, C2, H2, W2 = 1, 16, 16, 256
    x2 = jax.random.normal(k1, (B2, C2, H2, W2), dtype=jnp.float32)
    w2 = 1.0 + 0.1 * jax.random.normal(k0, (C2,), dtype=jnp.float32)
    b2 = 0.05 * jax.random.normal(k0, (C2,), dtype=jnp.float32)
    y2 = jax.block_until_ready(
        layernorm_nchw(x2, w2, b2, vmem_budget_bytes=256 * 1024))
    ref2 = _reference(x2, w2, b2, False)
    if not jnp.allclose(y2, ref2, atol=1e-4, rtol=1e-4):
        ok = False

    print("KERNEL_OK" if ok else "KERNEL_MISMATCH")
</pallas_src>

<mosaic_0001>
module attributes {stable_mosaic.version = 11 : i64} {
  func.func @_ln_kernel_withbias(%arg0: i32, %arg1: i32, %arg2: i32, %arg3: memref<1x32x16x16xf32, #tpu.memory_space<vmem>>, %arg4: memref<32x1x1xf32, #tpu.memory_space<vmem>>, %arg5: memref<32x1x1xf32, #tpu.memory_space<vmem>>, %arg6: memref<1x32x16x16xf32, #tpu.memory_space<vmem>>) attributes {dimension_semantics = [#tpu.dimension_semantics<parallel>, #tpu.dimension_semantics<parallel>, #tpu.dimension_semantics<parallel>], iteration_bounds = array<i64: 2, 1, 1>, scalar_prefetch = 0 : i64, scratch_operands = 0 : i64, tpu.core_type = #tpu.core_type<tc>, window_params = [{transform_indices = @transform_0, window_bounds = array<i64: 1, 32, 16, 16>}, {pipeline_mode = #tpu.pipeline_mode<synchronous>, transform_indices = @transform_1, window_bounds = array<i64: 32, 1, 1>}, {pipeline_mode = #tpu.pipeline_mode<synchronous>, transform_indices = @transform_2, window_bounds = array<i64: 32, 1, 1>}, {transform_indices = @transform_3, window_bounds = array<i64: 1, 32, 16, 16>}]} {
    %c0 = arith.constant 0 : index
    %c0_0 = arith.constant 0 : index
    %c0_1 = arith.constant 0 : index
    %c0_2 = arith.constant 0 : index
    %0 = vector.load %arg3[%c0, %c0_0, %c0_1, %c0_2] : memref<1x32x16x16xf32, #tpu.memory_space<vmem>>, vector<1x32x16x16xf32>
    %1 = vector.shape_cast %0 : vector<1x32x16x16xf32> to vector<32x16x16xf32>
    %cst = arith.constant dense<0.000000e+00> : vector<16x16xf32>
    %2 = vector.multi_reduction <add>, %1, %cst [0] : vector<32x16x16xf32> to vector<16x16xf32>
    %3 = vector.shape_cast %2 : vector<16x16xf32> to vector<1x16x16xf32>
    %4 = arith.mulf %1, %1 : vector<32x16x16xf32>
    %cst_3 = arith.constant dense<0.000000e+00> : vector<16x16xf32>
    %5 = vector.multi_reduction <add>, %4, %cst_3 [0] : vector<32x16x16xf32> to vector<16x16xf32>
    %6 = vector.shape_cast %5 : vector<16x16xf32> to vector<1x16x16xf32>
    %cst_4 = arith.constant 3.125000e-02 : f32
    %7 = vector.broadcast %cst_4 : f32 to vector<1x16x16xf32>
    %8 = arith.mulf %3, %7 : vector<1x16x16xf32>
    %cst_5 = arith.constant 3.125000e-02 : f32
    %9 = vector.broadcast %cst_5 : f32 to vector<1x16x16xf32>
    %10 = arith.mulf %6, %9 : vector<1x16x16xf32>
    %11 = arith.mulf %8, %8 : vector<1x16x16xf32>
    %12 = arith.subf %10, %11 : vector<1x16x16xf32>
    %cst_6 = arith.constant 0.000000e+00 : f32
    %13 = vector.broadcast %cst_6 : f32 to vector<1x16x16xf32>
    %14 = arith.maximumf %12, %13 : vector<1x16x16xf32>
    %cst_7 = arith.constant 9.99999974E-6 : f32
    %15 = vector.broadcast %cst_7 : f32 to vector<1x16x16xf32>
    %16 = arith.addf %14, %15 : vector<1x16x16xf32>
    %17 = math.rsqrt %16 : vector<1x16x16xf32>
    %c0_8 = arith.constant 0 : index
    %c0_9 = arith.constant 0 : index
    %c0_10 = arith.constant 0 : index
    %18 = vector.load %arg4[%c0_8, %c0_9, %c0_10] : memref<32x1x1xf32, #tpu.memory_space<vmem>>, vector<32x1x1xf32>
    %c0_11 = arith.constant 0 : index
    %c0_12 = arith.constant 0 : index
    %c0_13 = arith.constant 0 : index
    %19 = vector.load %arg5[%c0_11, %c0_12, %c0_13] : memref<32x1x1xf32, #tpu.memory_space<vmem>>, vector<32x1x1xf32>
    %20 = vector.broadcast %8 : vector<1x16x16xf32> to vector<32x16x16xf32>
    %21 = arith.subf %1, %20 : vector<32x16x16xf32>
    %22 = vector.broadcast %17 : vector<1x16x16xf32> to vector<32x16x16xf32>
    %23 = arith.mulf %21, %22 : vector<32x16x16xf32>
    %24 = vector.broadcast %18 : vector<32x1x1xf32> to vector<32x16x16xf32>
    %25 = arith.mulf %23, %24 : vector<32x16x16xf32>
    %26 = vector.broadcast %19 : vector<32x1x1xf32> to vector<32x16x16xf32>
    %27 = arith.addf %25, %26 : vector<32x16x16xf32>
    %c0_14 = arith.constant 0 : index
    %c0_15 = arith.constant 0 : index
    %c0_16 = arith.constant 0 : index
    %c0_17 = arith.constant 0 : index
    %28 = vector.load %arg6[%c0_14, %c0_15, %c0_16, %c0_17] : memref<1x32x16x16xf32, #tpu.memory_space<vmem>>, vector<1x32x16x16xf32>
    %29 = vector.shape_cast %28 : vector<1x32x16x16xf32> to vector<32x16x16xf32>
    %30 = vector.shape_cast %27 : vector<32x16x16xf32> to vector<1x32x16x16xf32>
    tpu.vector_store %arg6[%c0_14, %c0_15, %c0_16, %c0_17], %30 {strides = array<i32>} : memref<1x32x16x16xf32, #tpu.memory_space<vmem>>, vector<1x32x16x16xf32>,
    return
  }
  func.func @transform_0(%arg0: i32, %arg1: i32, %arg2: i32) -> (i32, i32, i32, i32) {
    %c0_i32 = arith.constant 0 : i32
    %c0_i32_0 = arith.constant 0 : i32
    return %arg0, %c0_i32, %arg1, %arg2 : i32, i32, i32, i32
  }
  func.func @transform_1(%arg0: i32, %arg1: i32, %arg2: i32) -> (i32, i32, i32) {
    %c0_i32 = arith.constant 0 : i32
    %c0_i32_0 = arith.constant 0 : i32
    %c0_i32_1 = arith.constant 0 : i32
    %c0_i32_2 = arith.constant 0 : i32
    return %c0_i32, %c0_i32_0, %c0_i32_1 : i32, i32, i32
  }
  func.func @transform_2(%arg0: i32, %arg1: i32, %arg2: i32) -> (i32, i32, i32) {
    %c0_i32 = arith.constant 0 : i32
    %c0_i32_0 = arith.constant 0 : i32
    %c0_i32_1 = arith.constant 0 : i32
    %c0_i32_2 = arith.constant 0 : i32
    return %c0_i32, %c0_i32_0, %c0_i32_1 : i32, i32, i32
  }
  func.func @transform_3(%arg0: i32, %arg1: i32, %arg2: i32) -> (i32, i32, i32, i32) {
    %c0_i32 = arith.constant 0 : i32
    %c0_i32_0 = arith.constant 0 : i32
    return %arg0, %c0_i32, %arg1, %arg2 : i32, i32, i32, i32
  }
}

</mosaic_0001>

<bundles_post_ra>
// kernel: tpu_custom_call.1
= control target key start
LH: loop header
LB: loop body
LE: loop exit
PB: predicated region body
PF: predicated region fallthrough
CT: control target
= control target key end

     0   :  { %s1883_s12 = smov 0   ;;  %s1885_s13 = smov 0   ;;  %s3113_s0 = inlined_call_operand.vmem [shape: f32[2,32,16,16], index: 0, kind: input, shape index: {}]   ;;  %s3114_s1 = inlined_call_operand.vmem [shape: f32[32,1,1], index: 1, kind: input, shape index: {}]   ;;  %s3115_s2 = inlined_call_operand.vmem [shape: f32[32,1,1], index: 2, kind: input, shape index: {}]   ;;  %s3116_s3 = inlined_call_operand.vmem [shape: f32[2,32,16,16], index: 3, kind: output, shape index: {}]  }
   0x1   :  { %s1887_s14 = smov 0  }
   0x2 LB: > { %s32_s15 = sadd.s32 1, %s1856_s13  ;;  %p1698_p0 = scmp.ge.s32.totalorder %s1860_s14, 1  ;;  %s1860_s14 = sphi %s1887_s14, %s13_s14   ;;  %s1856_s13 = sphi %s1885_s13, %s3185_s13   ;;  %s1852_s12 = sphi %s1883_s12, %s3184_s12  }
   0x3   : > { %p34_p1 = scmp.ge.s32.totalorder %s32_s15, 2  ;;  %p172_p2 = scmp.lt.s32.totalorder %s1860_s14, 3 }
   0x5   : > { %s3187_s15 = smov (%p34_p1, %s32_s15), 0  ;;  %p173_p3 = pnand %p1698_p0, %p172_p2 }
   0x7   : > { %176 = sbr.rel (%p173_p3) target bundleno = 272 (0x110), region = 32 }
   0xe   : > { %v1705_v0 = vld [vmem:[%s3114_s1 + $0x2] ss:$0 sm:$0xff]  ;;  %v1703_v1 = vld [vmem:[%s3114_s1] ss:$0 sm:$0xff]  ;;  %v1862_v2 = vmov 0   ;;  %p211_p4 = scmp.lt.s32.totalorder %s1852_s12, 1 }
   0xf   : > { %1797 = vset.pattern.permute.xlu1 %v1862_v2  ;;  %1796 = vset.pattern.permute.xlu0 %v1862_v2  ;;  %v1706_v3 = vld [vmem:[%s3114_s1 + $0x3] ss:$0 sm:$0xff]  ;;  %v1704_v4 = vld [vmem:[%s3114_s1 + $0x1] ss:$0 sm:$0xff]  ;;  %v1708_v5 = vld [vmem:[%s3114_s1 + $0x5] ss:$0 sm:$0xff] }
  0x10   : > { %992 = vperm.xlu1 %1797, %v1705_v0   ;;  %984 = vperm.xlu0 %1796, %v1703_v1   ;;  %v1707_v6 = vld [vmem:[%s3114_s1 + $0x4] ss:$0 sm:$0xff]  ;;  %v1710_v7 = vld [vmem:[%s3114_s1 + $0x7] ss:$0 sm:$0xff]  ;;  %v1709_v8 = vld [vmem:[%s3114_s1 + $0x6] ss:$0 sm:$0xff] }
  0x11   : > { %v1712_v9 = vld [vmem:[%s3114_s1 + $0x9] ss:$0 sm:$0xff]  ;;  %v1711_v10 = vld [vmem:[%s3114_s1 + $0x8] ss:$0 sm:$0xff]  ;;  %v1714_v11 = vld [vmem:[%s3114_s1 + $0xb] ss:$0 sm:$0xff] }
  0x12   : > { %v1713_v12 = vld [vmem:[%s3114_s1 + $0xa] ss:$0 sm:$0xff]  ;;  %s3189_s12 = smov (!%p211_p4, %s1852_s12), 1  ;;  %v1716_v13 = vld [vmem:[%s3114_s1 + $0xd] ss:$0 sm:$0xff]  ;;  %vm300_vm0 = vcmask 130048  }
  0x13   : > { %v1715_v14 = vld [vmem:[%s3114_s1 + $0xc] ss:$0 sm:$0xff]  ;;  %s1769_s21 = sshll.u32 %s3189_s12, 9  ;;  %v1718_v15 = vld [vmem:[%s3114_s1 + $0xf] ss:$0 sm:$0xff] }
  0x14   : > { %996 = vperm.xlu1 %1797, %v1706_v3   ;;  %988 = vperm.xlu0 %1796, %v1704_v4   ;;  %s1955_s24 = scalar_lea.vmem %s3113_s0, %s1769_s21  ;;  %v1717_v16 = vld [vmem:[%s3114_s1 + $0xe] ss:$0 sm:$0xff]  ;;  %v1720_v41 = vld [vmem:[%s3114_s1 + $0x11] ss:$0 sm:$0xff]  ;;  %v1719_v42 = vld [vmem:[%s3114_s1 + $0x10] ss:$0 sm:$0xff]  ;;  %s2778_s20 = scalar_lea.vmem %s3116_s3, %s1769_s21 }
  0x15   : > { %v1964_v17 = vld [vmem:[%s1955_s24] sm:$0xff]  ;;  %v1967_v18 = vld [vmem:[%s1955_s24 + $0x8] sm:$0xff]  ;;  %v1970_v19 = vld [vmem:[%s1955_s24 + $0x10] sm:$0xff] }
  0x16   : > { %v1973_v20 = vld [vmem:[%s1955_s24 + $0x18] sm:$0xff]  ;;  %v1976_v21 = vld [vmem:[%s1955_s24 + $0x20] sm:$0xff]  ;;  %v1979_v22 = vld [vmem:[%s1955_s24 + $0x28] sm:$0xff]  ;;  %v301_v23 = vsel %vm300_vm0, %v1964_v17, 0.0  ;;  %v302_v24 = vsel %vm300_vm0, %v1970_v19, 0.0  ;;  %v364_v25 = vsel %vm300_vm0, %v1967_v18, 0.0 }
  0x17   : > { %v1988_v26 = vld [vmem:[%s1955_s24 + $0x30] sm:$0xff]  ;;  %v1991_v27 = vld [vmem:[%s1955_s24 + $0x38] sm:$0xff]  ;;  %v1994_v28 = vld [vmem:[%s1955_s24 + $0x40] sm:$0xff]  ;;  %v303_v29 = vadd.f32 %v302_v24, %v301_v23  ;;  %v304_v30 = vsel %vm300_vm0, %v1976_v21, 0.0  ;;  %v365_v31 = vsel %vm300_vm0, %v1973_v20, 0.0  ;;  %v367_v32 = vsel %vm300_vm0, %v1979_v22, 0.0 }
  0x18   : > { %1004 = vperm.xlu1 %1797, %v1708_v5   ;;  %1000 = vperm.xlu0 %1796, %v1707_v6   ;;  %v2003_v33 = vld [vmem:[%s1955_s24 + $0x48] sm:$0xff]  ;;  %v306_v34 = vsel %vm300_vm0, %v1988_v26, 0.0  ;;  %v366_v35 = vadd.f32 %v365_v31, %v364_v25  ;;  %v2008_v36 = vld [vmem:[%s1955_s24 + $0x50] sm:$0xff]  ;;  %v369_v38 = vsel %vm300_vm0, %v1991_v27, 0.0  ;;  %v308_v39 = vsel %vm300_vm0, %v1994_v28, 0.0  ;;  %v2021_v43 = vld [vmem:[%s1955_s24 + $0x60] sm:$0xff] }
  0x19   : > { %v305_v37 = vadd.f32 %v304_v30, %v303_v29  ;;  %v371_v45 = vsel %vm300_vm0, %v2003_v33, 0.0  ;;  %v2026_v46 = vld [vmem:[%s1955_s24 + $0x58] sm:$0xff]  ;;  %v310_v47 = vsel %vm300_vm0, %v2008_v36, 0.0  ;;  %v2031_v49 = vld [vmem:[%s1955_s24 + $0x70] sm:$0xff]  ;;  %v312_v51 = vsel %vm300_vm0, %v2021_v43, 0.0  ;;  %v2042_v55 = vld [vmem:[%s1955_s24 + $0x80] sm:$0xff] }
  0x1a   : > { %v368_v40 = vadd.f32 %v367_v32, %v366_v35  ;;  %v1722_v53 = vld [vmem:[%s3114_s1 + $0x13] ss:$0 sm:$0xff]  ;;  %v1721_v54 = vld [vmem:[%s3114_s1 + $0x12] ss:$0 sm:$0xff]  ;;  %v373_v57 = vsel %vm300_vm0, %v2026_v46, 0.0  ;;  %v2047_v58 = vld [vmem:[%s1955_s24 + $0x68] sm:$0xff] }
  0x1b   : > { %v307_v44 = vadd.f32 %v306_v34, %v305_v37  ;;  %v314_v59 = vsel %vm300_vm0, %v2031_v49, 0.0  ;;  %v2052_v60 = vld [vmem:[%s1955_s24 + $0x90] sm:$0xff]  ;;  %v316_v62 = vsel %vm300_vm0, %v2042_v55, 0.0  ;;  %v2063_v2 = vld [vmem:[%s1955_s24 + $0xa0] sm:$0xff]  ;;  %v375_v4 = vsel %vm300_vm0, %v2047_v58, 0.0  ;;  %v2068_v5 = vld [vmem:[%s1955_s24 + $0x78] sm:$0xff] }
  0x1c   : > { %1012 = vperm.xlu1 %1797, %v1710_v7   ;;  %1008 = vperm.xlu0 %1796, %v1709_v8   ;;  %v370_v48 = vadd.f32 %v369_v38, %v368_v40  ;;  %v1724_v0 = vld [vmem:[%s3114_s1 + $0x15] ss:$0 sm:$0xff]  ;;  %v1723_v1 = vld [vmem:[%s3114_s1 + $0x14] ss:$0 sm:$0xff]  ;;  %v318_v6 = vsel %vm300_vm0, %v2052_v60, 0.0  ;;  %v2091_v23 = vld [vmem:[%s1955_s24 + $0xc0] sm:$0xff] }
  0x1d   : > { %v309_v50 = vadd.f32 %v308_v39, %v307_v44  ;;  %v2073_v7 = vld [vmem:[%s1955_s24 + $0xb0] sm:$0xff]  ;;  %v1728_v29 = vld [vmem:[%s3114_s1 + $0x19] ss:$0 sm:$0xff]  ;;  %v1727_v30 = vld [vmem:[%s3114_s1 + $0x18] ss:$0 sm:$0xff]  ;;  %v324_v35 = vsel %vm300_vm0, %v2091_v23, 0.0 }
  0x1e   : > { %v372_v52 = vadd.f32 %v371_v45, %v370_v48  ;;  %v2102_v34 = vld [vmem:[%s1955_s24 + $0x98] sm:$0xff]  ;;  %v2107_v37 = vld [vmem:[%s1955_s24 + $0xd0] sm:$0xff]  ;;  %v2118_v44 = vld [vmem:[%s1955_s24 + $0xa8] sm:$0xff] }
  0x1f   : > { %v311_v56 = vadd.f32 %v310_v47, %v309_v50  ;;  %v1730_v39 = vld [vmem:[%s3114_s1 + $0x1b] ss:$0 sm:$0xff]  ;;  %v1729_v40 = vld [vmem:[%s3114_s1 + $0x1a] ss:$0 sm:$0xff]  ;;  %v326_v45 = vsel %vm300_vm0, %v2107_v37, 0.0  ;;  %v2123_v47 = vld [vmem:[%s1955_s24 + $0xe0] sm:$0xff] }
  0x20   : > { %1020 = vperm.xlu1 %1797, %v1712_v9   ;;  %1016 = vperm.xlu0 %1796, %v1711_v10   ;;  %v374_v63 = vadd.f32 %v373_v57, %v372_v52  ;;  %v320_v9 = vsel %vm300_vm0, %v2063_v2, 0.0  ;;  %v1732_v50 = vld [vmem:[%s3114_s1 + $0x1d] ss:$0 sm:$0xff]  ;;  %v2139_v57 = vld [vmem:[%s1955_s24 + $0xf0] sm:$0xff] }
  0x21   : > { %v313_v61 = vadd.f32 %v312_v51, %v311_v56  ;;  %v1731_v51 = vld [vmem:[%s3114_s1 + $0x1c] ss:$0 sm:$0xff]  ;;  %v328_v56 = vsel %vm300_vm0, %v2123_v47, 0.0 }
  0x22   : > { %v376_v10 = vadd.f32 %v375_v4, %v374_v63  ;;  %v2155_v4 = vld [vmem:[%s1955_s24 + $0x100] sm:$0xff] }
  0x23   : > { %v315_v3 = vadd.f32 %v314_v59, %v313_v61  ;;  %v1734_v61 = vld [vmem:[%s3114_s1 + $0x1f] ss:$0 sm:$0xff] }
  0x24   : > { %1028 = vperm.xlu1 %1797, %v1714_v11   ;;  %1024 = vperm.xlu0 %1796, %v1713_v12   ;;  %v1726_v11 = vld [vmem:[%s3114_s1 + $0x17] ss:$0 sm:$0xff]  ;;  %v1725_v12 = vld [vmem:[%s3114_s1 + $0x16] ss:$0 sm:$0xff] }
  0x25   : > { %v317_v8 = vadd.f32 %v316_v62, %v315_v3  ;;  %v1733_v62 = vld [vmem:[%s3114_s1 + $0x1e] ss:$0 sm:$0xff]  ;;  %v330_v3 = vsel %vm300_vm0, %v2139_v57, 0.0 }
  0x28   : > { %1036 = vperm.xlu1 %1797, %v1716_v13   ;;  %1032 = vperm.xlu0 %1796, %v1715_v14   ;;  %v319_v13 = vadd.f32 %v318_v6, %v317_v8  ;;  %v377_v14 = vsel %vm300_vm0, %v2068_v5, 0.0  ;;  %v1736_v8 = vld [vmem:[%s3115_s2 + $0x1] ss:$0 sm:$0xff] }
  0x29   : > { %v378_v25 = vadd.f32 %v377_v14, %v376_v10  ;;  %v2164_v10 = vld [vmem:[%s1955_s24 + $0xd8] sm:$0xff]  ;;  %v429_v14 = vmul.f32 %v1970_v19, %v1970_v19  ;;  %v1737_v19 = vld [vmem:[%s3115_s2 + $0x2] ss:$0 sm:$0xff] }
  0x2a   : > { %v321_v24 = vadd.f32 %v320_v9, %v319_v13  ;;  %v1735_v9 = vld [vmem:[%s3115_s2] ss:$0 sm:$0xff]  ;;  %v427_v13 = vmul.f32 %v1964_v17, %v1964_v17  ;;  %v1738_v17 = vld [vmem:[%s3115_s2 + $0x3] ss:$0 sm:$0xff] }
  0x2c   : > { %1044 = vperm.xlu1 %1797, %v1718_v15   ;;  %1040 = vperm.xlu0 %1796, %v1717_v16   ;;  %v2086_v15 = vld [vmem:[%s1955_s24 + $0x88] sm:$0xff]  ;;  %v322_v16 = vsel %vm300_vm0, %v2073_v7, 0.0 }
  0x2d   : > { %v323_v31 = vadd.f32 %v322_v16, %v321_v24  ;;  %v379_v32 = vsel %vm300_vm0, %v2086_v15, 0.0  ;;  %v332_v16 = vsel %vm300_vm0, %v2155_v4, 0.0  ;;  %v2175_v24 = vld [vmem:[%s1955_s24 + $0x110] sm:$0xff] }
  0x2e   : > { %v380_v38 = vadd.f32 %v379_v32, %v378_v25  ;;  %v431_v25 = vmul.f32 %v1976_v21, %v1976_v21  ;;  %v433_v32 = vmul.f32 %v1988_v26, %v1988_v26  ;;  %v491_v21 = vsel %vm300_vm0, %v427_v13, 0.0 }
  0x2f   : > { %v441_v13 = vmul.f32 %v2031_v49, %v2031_v49 }
  0x30   : > { %1052 = vperm.xlu1 %1797, %v1720_v41   ;;  %1048 = vperm.xlu0 %1796, %v1719_v42   ;;  %v325_v41 = vadd.f32 %v324_v35, %v323_v31  ;;  %v381_v42 = vsel %vm300_vm0, %v2102_v34, 0.0  ;;  %v492_v35 = vsel %vm300_vm0, %v429_v14, 0.0 }
  0x31   : > { %v382_v48 = vadd.f32 %v381_v42, %v380_v38  ;;  %v2192_v38 = vld [vmem:[%s1955_s24 + $0xe8] sm:$0xff]  ;;  %v494_v42 = vsel %vm300_vm0, %v431_v25, 0.0  ;;  %v428_v25 = vmul.f32 %v1967_v18, %v1967_v18 }
  0x32   : > { %v327_v52 = vadd.f32 %v326_v45, %v325_v41  ;;  %v435_v41 = vmul.f32 %v1994_v28, %v1994_v28  ;;  %v493_v45 = vadd.f32 %v492_v35, %v491_v21  ;;  %v437_v28 = vmul.f32 %v2008_v36, %v2008_v36  ;;  %v1742_v36 = vld [vmem:[%s3115_s2 + $0x7] ss:$0 sm:$0xff] }
  0x34   : > { %1060 = vperm.xlu1 %1797, %v1722_v53   ;;  %1056 = vperm.xlu0 %1796, %v1721_v54   ;;  %v383_v53 = vsel %vm300_vm0, %v2118_v44, 0.0  ;;  %v2134_v54 = vld [vmem:[%s1955_s24 + $0xb8] sm:$0xff]  ;;  %v329_v63 = vadd.f32 %v328_v56, %v327_v52  ;;  %v391_v52 = vsel %vm300_vm0, %v2192_v38, 0.0  ;;  %v500_v14 = vsel %vm300_vm0, %v437_v28, 0.0 }
  0x35   : > { %v384_v59 = vadd.f32 %v383_v53, %v382_v48  ;;  %v1740_v48 = vld [vmem:[%s3115_s2 + $0x5] ss:$0 sm:$0xff]  ;;  %v496_v53 = vsel %vm300_vm0, %v433_v32, 0.0  ;;  %v2214_v56 = vld [vmem:[%s1955_s24 + $0xf8] sm:$0xff] }
  0x38   : > { %1068 = vperm.xlu1 %1797, %v1724_v0   ;;  %1064 = vperm.xlu0 %1796, %v1723_v1   ;;  %v385_v0 = vsel %vm300_vm0, %v2134_v54, 0.0  ;;  %v2150_v1 = vld [vmem:[%s1955_s24 + $0xc8] sm:$0xff] }
  0x39   : > { %v386_v6 = vadd.f32 %v385_v0, %v384_v59  ;;  %v498_v0 = vsel %vm300_vm0, %v435_v41, 0.0  ;;  %v445_v41 = vmul.f32 %v2052_v60, %v2052_v60 }
  0x3c   : > { %1076 = vperm.xlu1 %1797, %v1726_v11   ;;  %1072 = vperm.xlu0 %1796, %v1725_v12   ;;  %v331_v11 = vadd.f32 %v330_v3, %v329_v63  ;;  %v387_v12 = vsel %vm300_vm0, %v2150_v1, 0.0  ;;  %v439_v63 = vmul.f32 %v2021_v43, %v2021_v43  ;;  %v393_v43 = vsel %vm300_vm0, %v2214_v56, 0.0 }
  0x3e   : > { %v333_v31 = vadd.f32 %v332_v16, %v331_v11  ;;  %v2234_v11 = vld [vmem:[%s1955_s24 + $0x140] sm:$0xff]  ;;  %v502_v49 = vsel %vm300_vm0, %v439_v63, 0.0  ;;  %v2292_v63 = vld [vmem:[%s1955_s24 + $0x128] sm:$0xff] }
  0x40   : > { %1084 = vperm.xlu1 %1797, %v1728_v29   ;;  %1080 = vperm.xlu0 %1796, %v1727_v30   ;;  %v388_v29 = vadd.f32 %v387_v12, %v386_v6  ;;  %v389_v30 = vsel %vm300_vm0, %v2164_v10, 0.0 }
  0x42   : > { %v390_v26 = vadd.f32 %v389_v30, %v388_v29  ;;  %v430_v30 = vmul.f32 %v1973_v20, %v1973_v20  ;;  %v1744_v20 = vld [vmem:[%s3115_s2 + $0x9] ss:$0 sm:$0xff] }
  0x44   : > { %1092 = vperm.xlu1 %1797, %v1730_v39   ;;  %1088 = vperm.xlu0 %1796, %v1729_v40   ;;  %v334_v39 = vsel %vm300_vm0, %v2175_v24, 0.0  ;;  %v2197_v40 = vld [vmem:[%s1955_s24 + $0x120] sm:$0xff]  ;;  %v392_v3 = vadd.f32 %v391_v52, %v390_v26  ;;  %v436_v26 = vmul.f32 %v2003_v33, %v2003_v33  ;;  %v554_v52 = vsel %vm300_vm0, %v428_v25, 0.0  ;;  %v1746_v33 = vld [vmem:[%s3115_s2 + $0xb] ss:$0 sm:$0xff] }
  0x45   : > { %v336_v59 = vsel %vm300_vm0, %v2197_v40, 0.0  ;;  %v555_v60 = vsel %vm300_vm0, %v430_v30, 0.0 }
  0x46   : > { %v394_v32 = vadd.f32 %v393_v43, %v392_v3  ;;  %v508_v3 = vsel %vm300_vm0, %v445_v41, 0.0 }
  0x48   : > { %1100 = vperm.xlu1 %1797, %v1732_v50   ;;  %1096 = vperm.xlu0 %1796, %v1731_v51   ;;  %v1739_v50 = vld [vmem:[%s3115_s2 + $0x4] ss:$0 sm:$0xff]  ;;  %v335_v51 = vadd.f32 %v334_v39, %v333_v31  ;;  %v340_v31 = vsel %vm300_vm0, %v2234_v11, 0.0  ;;  %v434_v39 = vmul.f32 %v1991_v27, %v1991_v27 }
  0x4a   : > { %v337_v12 = vadd.f32 %v336_v59, %v335_v51  ;;  %v2277_v51 = vld [vmem:[%s1955_s24 + $0x150] sm:$0xff]  ;;  %v556_v59 = vadd.f32 %v555_v60, %v554_v52 }
  0x4c   : > { %1108 = vperm.xlu1 %1797, %v1734_v61   ;;  %1104 = vperm.xlu0 %1796, %v1733_v62   ;;  %v495_v61 = vadd.f32 %v494_v42, %v493_v45  ;;  %v2219_v62 = vld [vmem:[%s1955_s24 + $0x130] sm:$0xff]  ;;  %v504_v42 = vsel %vm300_vm0, %v441_v13, 0.0  ;;  %v438_v45 = vmul.f32 %v2026_v46, %v2026_v46 }
  0x4d   : > { %v338_v16 = vsel %vm300_vm0, %v2219_v62, 0.0 }
  0x4e   : > { %v497_v6 = vadd.f32 %v496_v53, %v495_v61  ;;  %v339_v35 = vadd.f32 %v338_v16, %v337_v12  ;;  %v1745_v61 = vld [vmem:[%s3115_s2 + $0xa] ss:$0 sm:$0xff]  ;;  %v440_v12 = vmul.f32 %v2047_v58, %v2047_v58  ;;  %v442_v16 = vmul.f32 %v2068_v5, %v2068_v5  ;;  %v1748_v58 = vld [vmem:[%s3115_s2 + $0xd] ss:$0 sm:$0xff] }
  0x50   : > { %1340 = vperm.xlu1 %1797, %v1736_v8   ;;  %1336 = vperm.xlu0 %1796, %v1735_v9   ;;  %v1741_v8 = vld [vmem:[%s3115_s2 + $0x6] ss:$0 sm:$0xff]  ;;  %v2231_v9 = vld [vmem:[%s1955_s24 + $0x108] sm:$0xff]  ;;  %v499_v29 = vadd.f32 %v498_v0, %v497_v6  ;;  %v341_v0 = vadd.f32 %v340_v31, %v339_v35  ;;  %v559_v6 = vsel %vm300_vm0, %v434_v39, 0.0  ;;  %v2320_v31 = vld [vmem:[%s1955_s24 + $0x138] sm:$0xff]  ;;  %v444_v35 = vmul.f32 %v2086_v15, %v2086_v15 }
  0x51   : > { %v395_v18 = vsel %vm300_vm0, %v2231_v9, 0.0  ;;  %v1750_v15 = vld [vmem:[%s3115_s2 + $0xf] ss:$0 sm:$0xff] }
  0x52   : > { %v501_v21 = vadd.f32 %v500_v14, %v499_v29  ;;  %v396_v46 = vadd.f32 %v395_v18, %v394_v32  ;;  %v2303_v14 = vld [vmem:[%s1955_s24 + $0x160] sm:$0xff]  ;;  %v561_v29 = vsel %vm300_vm0, %v436_v26, 0.0  ;;  %v453_v18 = vmul.f32 %v2107_v37, %v2107_v37 }
  0x53   : > { %v446_v26 = vmul.f32 %v2102_v34, %v2102_v34  ;;  %v455_v37 = vmul.f32 %v2123_v47, %v2123_v47  ;;  %v1749_v47 = vld [vmem:[%s3115_s2 + $0xe] ss:$0 sm:$0xff] }
  0x54   : > { %1348 = vperm.xlu1 %1797, %v1738_v17   ;;  %1344 = vperm.xlu0 %1796, %v1737_v19   ;;  %v432_v17 = vmul.f32 %v1979_v22, %v1979_v22  ;;  %v443_v19 = vmul.f32 %v2042_v55, %v2042_v55  ;;  %v1743_v22 = vld [vmem:[%s3115_s2 + $0x8] ss:$0 sm:$0xff]  ;;  %v2263_v55 = vld [vmem:[%s1955_s24 + $0x118] sm:$0xff] }
  0x56   : > { %v506_v27 = vsel %vm300_vm0, %v443_v19, 0.0  ;;  %v557_v28 = vsel %vm300_vm0, %v432_v17, 0.0  ;;  %v399_v17 = vsel %vm300_vm0, %v2292_v63, 0.0 }
  0x57   : > { %v558_v13 = vadd.f32 %v557_v28, %v556_v59  ;;  %v2348_v28 = vld [vmem:[%s1955_s24 + $0x148] sm:$0xff] }
  0x58   : > { %1356 = vperm.xlu1 %1797, %v1740_v48   ;;  %1352 = vperm.xlu0 %1796, %v1739_v50   ;;  %v447_v48 = vmul.f32 %v2063_v2, %v2063_v2  ;;  %v503_v50 = vadd.f32 %v502_v49, %v501_v21  ;;  %v397_v2 = vsel %vm300_vm0, %v2263_v55, 0.0 }
  0x59   : > { %v398_v30 = vadd.f32 %v397_v2, %v396_v46  ;;  %v560_v49 = vadd.f32 %v559_v6, %v558_v13  ;;  %v457_v46 = vmul.f32 %v2139_v57, %v2139_v57  ;;  %v516_v2 = vsel %vm300_vm0, %v453_v18, 0.0  ;;  %v2387_v18 = vld [vmem:[%s1955_s24 + $0x190] sm:$0xff] }
  0x5a   : > { %v505_v53 = vadd.f32 %v504_v42, %v503_v50  ;;  %v510_v25 = vsel %vm300_vm0, %v447_v48, 0.0  ;;  %v2331_v42 = vld [vmem:[%s1955_s24 + $0x170] sm:$0xff]  ;;  %v450_v6 = vmul.f32 %v2134_v54, %v2134_v54  ;;  %v459_v57 = vmul.f32 %v2155_v4, %v2155_v4 }
  0x5b   : > { %v562_v41 = vadd.f32 %v561_v29, %v560_v49  ;;  %v400_v50 = vadd.f32 %v399_v17, %v398_v30  ;;  %v346_v59 = vsel %vm300_vm0, %v2331_v42, 0.0  ;;  %v403_v13 = vsel %vm300_vm0, %v2348_v28, 0.0  ;;  %v1751_v4 = vld [vmem:[%s3115_s2 + $0x10] ss:$0 sm:$0xff] }
  0x5c   : > { %1364 = vperm.xlu1 %1797, %v1742_v36   ;;  %1360 = vperm.xlu0 %1796, %v1741_v8   ;;  %v449_v36 = vmul.f32 %v2073_v7, %v2073_v7  ;;  %v342_v8 = vsel %vm300_vm0, %v2277_v51, 0.0  ;;  %v507_v43 = vadd.f32 %v506_v27, %v505_v53  ;;  %v451_v7 = vmul.f32 %v2091_v23, %v2091_v23  ;;  %v1747_v23 = vld [vmem:[%s3115_s2 + $0xc] ss:$0 sm:$0xff] }
  0x5d   : > { %v343_v32 = vadd.f32 %v342_v8, %v341_v0  ;;  %v401_v27 = vsel %vm300_vm0, %v2320_v31, 0.0  ;;  %v567_v53 = vsel %vm300_vm0, %v442_v16, 0.0  ;;  %v518_v8 = vsel %vm300_vm0, %v455_v37, 0.0 }
  0x5e   : > { %v509_v19 = vadd.f32 %v508_v3, %v507_v43  ;;  %v512_v21 = vsel %vm300_vm0, %v449_v36, 0.0  ;;  %v514_v48 = vsel %vm300_vm0, %v451_v7, 0.0  ;;  %v2359_v3 = vld [vmem:[%s1955_s24 + $0x180] sm:$0xff]  ;;  %v402_v43 = vadd.f32 %v401_v27, %v400_v50 }
  0x5f   : > { %v520_v30 = vsel %vm300_vm0, %v457_v46, 0.0  ;;  %v571_v17 = vsel %vm300_vm0, %v446_v26, 0.0  ;;  %v452_v49 = vmul.f32 %v2150_v1, %v2150_v1  ;;  %v1754_v1 = vld [vmem:[%s3115_s2 + $0x13] ss:$0 sm:$0xff]  ;;  %v2404_v26 = vld [vmem:[%s1955_s24 + $0x168] sm:$0xff]  ;;  %v350_v50 = vsel %vm300_vm0, %v2387_v18, 0.0 }
  0x60   : > { %1372 = vperm.xlu1 %1797, %v1744_v20   ;;  %1368 = vperm.xlu0 %1796, %v1743_v22   ;;  %v563_v20 = vsel %vm300_vm0, %v438_v45, 0.0  ;;  %v344_v22 = vsel %vm300_vm0, %v2303_v14, 0.0  ;;  %v511_v39 = vadd.f32 %v510_v25, %v509_v19  ;;  %v565_v45 = vsel %vm300_vm0, %v440_v12, 0.0  ;;  %v2376_v25 = vld [vmem:[%s1955_s24 + $0x158] sm:$0xff] }
  0x61   : > { %v564_v60 = vadd.f32 %v563_v20, %v562_v41  ;;  %v569_v12 = vsel %vm300_vm0, %v444_v35, 0.0  ;;  %v348_v19 = vsel %vm300_vm0, %v2359_v3, 0.0  ;;  %v522_v20 = vsel %vm300_vm0, %v459_v57, 0.0 }
  0x62   : > { %v513_v52 = vadd.f32 %v512_v21, %v511_v39  ;;  %v454_v21 = vmul.f32 %v2164_v10, %v2164_v10  ;;  %v404_v35 = vadd.f32 %v403_v13, %v402_v43  ;;  %v405_v39 = vsel %vm300_vm0, %v2376_v25, 0.0 }
  0x63   : > { %v566_v36 = vadd.f32 %v565_v45, %v564_v60  ;;  %v456_v27 = vmul.f32 %v2192_v38, %v2192_v38  ;;  %v1756_v38 = vld [vmem:[%s3115_s2 + $0x15] ss:$0 sm:$0xff]  ;;  %v469_v57 = vmul.f32 %v2277_v51, %v2277_v51  ;;  %v460_v43 = vmul.f32 %v2231_v9, %v2231_v9  ;;  %v1758_v9 = vld [vmem:[%s3115_s2 + $0x17] ss:$0 sm:$0xff] }
  0x64   : > { %1380 = vperm.xlu1 %1797, %v1746_v33   ;;  %1376 = vperm.xlu0 %1796, %v1745_v61   ;;  %v345_v33 = vadd.f32 %v344_v22, %v343_v32  ;;  %v448_v61 = vmul.f32 %v2118_v44, %v2118_v44  ;;  %v515_v0 = vadd.f32 %v514_v48, %v513_v52  ;;  %v1752_v44 = vld [vmem:[%s3115_s2 + $0x11] ss:$0 sm:$0xff] }
  0x65   : > { %v568_v7 = vadd.f32 %v567_v53, %v566_v36  ;;  %v465_v48 = vmul.f32 %v2219_v62, %v2219_v62  ;;  %v467_v62 = vmul.f32 %v2234_v11, %v2234_v11  ;;  %v406_v53 = vadd.f32 %v405_v39, %v404_v35  ;;  %v1755_v11 = vld [vmem:[%s3115_s2 + $0x14] ss:$0 sm:$0xff]  ;;  %v2432_v36 = vld [vmem:[%s1955_s24 + $0x178] sm:$0xff] }
  0x66   : > { %v517_v16 = vadd.f32 %v516_v2, %v515_v0  ;;  %v347_v29 = vadd.f32 %v346_v59, %v345_v33  ;;  %v573_v22 = vsel %vm300_vm0, %v448_v61, 0.0  ;;  %v458_v33 = vmul.f32 %v2214_v56, %v2214_v56 }
  0x67   : > { %v570_v32 = vadd.f32 %v569_v12, %v568_v7  ;;  %v577_v2 = vsel %vm300_vm0, %v452_v49, 0.0  ;;  %v407_v59 = vsel %vm300_vm0, %v2404_v26, 0.0  ;;  %v579_v12 = vsel %vm300_vm0, %v454_v21, 0.0  ;;  %v2443_v7 = vld [vmem:[%s1955_s24 + $0x1b0] sm:$0xff] }
  0x68   : > { %1388 = vperm.xlu1 %1797, %v1748_v58   ;;  %1384 = vperm.xlu0 %1796, %v1747_v23   ;;  %v461_v58 = vmul.f32 %v2175_v24, %v2175_v24  ;;  %v519_v23 = vadd.f32 %v518_v8, %v517_v16  ;;  %v463_v24 = vmul.f32 %v2197_v40, %v2197_v40  ;;  %v1753_v40 = vld [vmem:[%s3115_s2 + $0x12] ss:$0 sm:$0xff]  ;;  %v528_v8 = vsel %vm300_vm0, %v465_v48, 0.0 }
  0x69   : > { %v572_v10 = vadd.f32 %v571_v17, %v570_v32  ;;  %v349_v37 = vadd.f32 %v348_v19, %v347_v29  ;;  %3135 = vst [vmem:[#allocation3_spill] sm:$0xff] %v2443_v7  ;;  %v471_v51 = vmul.f32 %v2303_v14, %v2303_v14  ;;  %v530_v29 = vsel %vm300_vm0, %v467_v62, 0.0  ;;  %v1757_v14 = vld [vmem:[%s3115_s2 + $0x16] ss:$0 sm:$0xff] }
  0x6a   : > { %v521_v41 = vadd.f32 %v520_v30, %v519_v23  ;;  %v524_v45 = vsel %vm300_vm0, %v461_v58, 0.0  ;;  %v526_v46 = vsel %vm300_vm0, %v463_v24, 0.0  ;;  %v581_v58 = vsel %vm300_vm0, %v456_v27, 0.0  ;;  %v2460_v23 = vld [vmem:[%s1955_s24 + $0x188] sm:$0xff] }
  0x6b   : > { %v574_v60 = vadd.f32 %v573_v22, %v572_v10  ;;  %v408_v30 = vadd.f32 %v407_v59, %v406_v53  ;;  %v409_v17 = vsel %vm300_vm0, %v2432_v36, 0.0  ;;  %3136 = vst [vmem:[#allocation4_spill] sm:$0xff] %v2460_v23  ;;  %v473_v21 = vmul.f32 %v2331_v42, %v2331_v42 }
  0x6c   : > { %1396 = vperm.xlu1 %1797, %v1750_v15   ;;  %1392 = vperm.xlu0 %1796, %v1749_v47   ;;  %v575_v15 = vsel %vm300_vm0, %v450_v6, 0.0  ;;  %v523_v52 = vadd.f32 %v522_v20, %v521_v41  ;;  %v2415_v47 = vld [vmem:[%s1955_s24 + $0x1a0] sm:$0xff]  ;;  %v351_v6 = vadd.f32 %v350_v50, %v349_v37  ;;  %v532_v24 = vsel %vm300_vm0, %v469_v57, 0.0 }
  0x6d   : > { %3134 = vst [vmem:[#allocation2_spill] sm:$0xff] %v2415_v47  ;;  %v576_v0 = vadd.f32 %v575_v15, %v574_v60  ;;  %v583_v20 = vsel %vm300_vm0, %v458_v33, 0.0  ;;  %v354_v22 = vsel %vm300_vm0, %v2443_v7, 0.0  ;;  %v2471_v41 = vld [vmem:[%s1955_s24 + $0x1c0] sm:$0xff]  ;;  %v466_v10 = vmul.f32 %v2320_v31, %v2320_v31  ;;  %v1759_v60 = vld [vmem:[%s3115_s2 + $0x18] ss:$0 sm:$0xff] }
  0x6e   : > { %v525_v61 = vadd.f32 %v524_v45, %v523_v52  ;;  %v534_v37 = vsel %vm300_vm0, %v471_v51, 0.0  ;;  %v585_v48 = vsel %vm300_vm0, %v460_v43, 0.0  ;;  %v1760_v45 = vld [vmem:[%s3115_s2 + $0x19] ss:$0 sm:$0xff]  ;;  %v410_v15 = vadd.f32 %v409_v17, %v408_v30  ;;  %v1761_v51 = vld [vmem:[%s3115_s2 + $0x1a] ss:$0 sm:$0xff] }
  0x6f   : > { %v578_v16 = vadd.f32 %v577_v2, %v576_v0  ;;  %v411_v50 = vsel %vm300_vm0, %v2460_v23, 0.0  ;;  %v2488_v33 = vld [vmem:[%s1955_s24 + $0x198] sm:$0xff]  ;;  %v536_v2 = vsel %vm300_vm0, %v473_v21, 0.0  ;;  %v356_v53 = vsel %vm300_vm0, %v2471_v41, 0.0  ;;  %v2527_v21 = vld [vmem:[%s1955_s24 + $0x1e0] sm:$0xff] }
  0x70   : > { %1404 = vperm.xlu1 %1797, %v1752_v44   ;;  %1400 = vperm.xlu0 %1796, %v1751_v4   ;;  %v352_v44 = vsel %vm300_vm0, %v2415_v47, 0.0  ;;  %v527_v13 = vadd.f32 %v526_v46, %v525_v61  ;;  %v462_v4 = vmul.f32 %v2263_v55, %v2263_v55  ;;  %v477_v46 = vmul.f32 %v2387_v18, %v2387_v18 }
  0x71   : > { %v580_v49 = vadd.f32 %v579_v12, %v578_v16  ;;  %v353_v32 = vadd.f32 %v352_v44, %v351_v6  ;;  %v468_v59 = vmul.f32 %v2348_v28, %v2348_v28  ;;  %v470_v6 = vmul.f32 %v2376_v25, %v2376_v25  ;;  %v1762_v44 = vld [vmem:[%s3115_s2 + $0x1b] ss:$0 sm:$0xff] }
  0x72   : > { %v529_v19 = vadd.f32 %v528_v8, %v527_v13  ;;  %v479_v57 = vmul.f32 %v2415_v47, %v2415_v47  ;;  %v412_v43 = vadd.f32 %v411_v50, %v410_v15  ;;  %v413_v13 = vsel %vm300_vm0, %v2488_v33, 0.0 }
  0x73   : > { %v582_v39 = vadd.f32 %v581_v58, %v580_v49  ;;  %v355_v62 = vadd.f32 %v354_v22, %v353_v32  ;;  %v540_v30 = vsel %vm300_vm0, %v477_v46, 0.0  ;;  %v591_v17 = vsel %vm300_vm0, %v466_v10, 0.0 }
  0x74   : > { %1412 = vperm.xlu1 %1797, %v1754_v1   ;;  %1408 = vperm.xlu0 %1796, %v1753_v40   ;;  %v464_v1 = vmul.f32 %v2292_v63, %v2292_v63  ;;  %v531_v35 = vadd.f32 %v530_v29, %v529_v19  ;;  %v475_v40 = vmul.f32 %v2359_v3, %v2359_v3  ;;  %v2516_v29 = vld [vmem:[%s1955_s24 + $0x1a8] sm:$0xff]  ;;  %v542_v22 = vsel %vm300_vm0, %v479_v57, 0.0 }
  0x75   : > { %v584_v52 = vadd.f32 %v583_v20, %v582_v39  ;;  %3137 = vst [vmem:[#allocation5_spill] sm:$0xff] %v2516_v29  ;;  %v357_v58 = vadd.f32 %v356_v53, %v355_v62  ;;  %v472_v49 = vmul.f32 %v2404_v26, %v2404_v26  ;;  %v483_v20 = vmul.f32 %v2471_v41, %v2471_v41 }
  0x76   : > { %v533_v27 = vadd.f32 %v532_v24, %v531_v35  ;;  %v538_v8 = vsel %vm300_vm0, %v475_v40, 0.0  ;;  %v589_v12 = vsel %vm300_vm0, %v464_v1, 0.0  ;;  %v474_v24 = vmul.f32 %v2432_v36, %v2432_v36  ;;  %v1764_v35 = vld [vmem:[%s3115_s2 + $0x1d] ss:$0 sm:$0xff] }
  0x77   : > { %v586_v0 = vadd.f32 %v585_v48, %v584_v52  ;;  %v593_v1 = vsel %vm300_vm0, %v468_v59, 0.0  ;;  %v414_v39 = vadd.f32 %v413_v13, %v412_v43  ;;  %v415_v10 = vsel %vm300_vm0, %v2516_v29, 0.0  ;;  %v1763_v48 = vld [vmem:[%s3115_s2 + $0x1c] ss:$0 sm:$0xff] }
  0x78   : > { %1420 = vperm.xlu1 %1797, %v1756_v38   ;;  %1416 = vperm.xlu0 %1796, %v1755_v11   ;;  %v587_v38 = vsel %vm300_vm0, %v462_v4, 0.0  ;;  %v535_v61 = vadd.f32 %v534_v37, %v533_v27  ;;  %v2499_v11 = vld [vmem:[%s1955_s24 + $0x1d0] sm:$0xff]  ;;  %v595_v52 = vsel %vm300_vm0, %v470_v6, 0.0  ;;  %v487_v53 = vmul.f32 %v2527_v21, %v2527_v21 }
  0x79   : > { %v588_v4 = vadd.f32 %v587_v38, %v586_v0  ;;  %v358_v19 = vsel %vm300_vm0, %v2499_v11, 0.0  ;;  %v485_v50 = vmul.f32 %v2499_v11, %v2499_v11  ;;  %v476_v38 = vmul.f32 %v2460_v23, %v2460_v23 }
  0x7a   : > { %v537_v16 = vadd.f32 %v536_v2, %v535_v61  ;;  %v359_v15 = vadd.f32 %v358_v19, %v357_v58  ;;  %v2553_v2 = vld [vmem:[%s1955_s24 + $0x1f0] sm:$0xff]  ;;  %v546_v59 = vsel %vm300_vm0, %v483_v20, 0.0  ;;  %v597_v61 = vsel %vm300_vm0, %v472_v49, 0.0 }
  0x7b   : > { %v590_v32 = vadd.f32 %v589_v12, %v588_v4  ;;  %v416_v0 = vadd.f32 %v415_v10, %v414_v39  ;;  %v1766_v12 = vld [vmem:[%s3115_s2 + $0x1f] ss:$0 sm:$0xff]  ;;  %v478_v13 = vmul.f32 %v2488_v33, %v2488_v33  ;;  %v599_v4 = vsel %vm300_vm0, %v474_v24, 0.0 }
  0x7c   : > { %1428 = vperm.xlu1 %1797, %v1758_v9   ;;  %1424 = vperm.xlu0 %1796, %v1757_v14   ;;  %v481_v9 = vmul.f32 %v2443_v7, %v2443_v7  ;;  %v539_v14 = vadd.f32 %v538_v8, %v537_v16  ;;  %v548_v16 = vsel %vm300_vm0, %v485_v50, 0.0  ;;  %v362_v58 = vsel %vm300_vm0, %v2553_v2, 0.0  ;;  %v1814_v7 = vld [vmem:[%s1955_s24 + $0x70] sm:$0xff] }
  0x7d   : > { %v592_v37 = vadd.f32 %v591_v17, %v590_v32  ;;  %v480_v19 = vmul.f32 %v2516_v29, %v2516_v29  ;;  %v550_v49 = vsel %vm300_vm0, %v487_v53, 0.0  ;;  %v603_v10 = vsel %vm300_vm0, %v478_v13, 0.0  ;;  %v1813_v29 = vld [vmem:[%s1955_s24 + $0x48] sm:$0xff] }
  0x7e   : > { %v541_v40 = vadd.f32 %v540_v30, %v539_v14  ;;  %v544_v27 = vsel %vm300_vm0, %v481_v9, 0.0  ;;  %v489_v9 = vmul.f32 %v2553_v2, %v2553_v2  ;;  %v601_v14 = vsel %vm300_vm0, %v476_v38, 0.0  ;;  %v2603_v38 = vld [vmem:[%s1955_s24 + $0x1e8] sm:$0xff] }
  0x7f   : > { %v594_v46 = vadd.f32 %v593_v1, %v592_v37 }
  0x80   : > { %1436 = vperm.xlu1 %1797, %v1760_v45   ;;  %1432 = vperm.xlu0 %1796, %v1759_v60   ;;  %v2544_v45 = vld [vmem:[%s1955_s24 + $0x1b8] sm:$0xff]  ;;  %v360_v60 = vsel %vm300_vm0, %v2527_v21, 0.0  ;;  %v543_v62 = vadd.f32 %v542_v22, %v541_v40  ;;  %v552_v37 = vsel %vm300_vm0, %v489_v9, 0.0 }
  0x81   : > { %3138 = vst [vmem:[#allocation6_spill] sm:$0xff] %v2544_v45  ;;  %v417_v6 = vsel %vm300_vm0, %v2544_v45, 0.0  ;;  %v596_v8 = vadd.f32 %v595_v52, %v594_v46  ;;  %v361_v43 = vadd.f32 %v360_v60, %v359_v15  ;;  %v2585_v22 = vld [vmem:[%s1955_s24 + $0x1d8] sm:$0xff]  ;;  %v482_v39 = vmul.f32 %v2544_v45, %v2544_v45 }
  0x82   : > { %v545_v57 = vadd.f32 %v544_v27, %v543_v62  ;;  %v418_v32 = vadd.f32 %v417_v6, %v416_v0  ;;  %v605_v27 = vsel %vm300_vm0, %v480_v19, 0.0  ;;  %v421_v62 = vsel %vm300_vm0, %v2585_v22, 0.0 }
  0x83   : > { %v598_v17 = vadd.f32 %v597_v61, %v596_v8  ;;  %v363_v1 = vadd.f32 %v362_v58, %v361_v43  ;;  %v486_v53 = vmul.f32 %v2585_v22, %v2585_v22  ;;  %v607_v61 = vsel %vm300_vm0, %v482_v39, 0.0 }
  0x84   : > { %1444 = vperm.xlu1 %1797, %v1762_v44   ;;  %1440 = vperm.xlu0 %1796, %v1761_v51   ;;  %v1765_v44 = vld [vmem:[%s3115_s2 + $0x1e] ss:$0 sm:$0xff]  ;;  %v2574_v51 = vld [vmem:[%s1955_s24 + $0x1c8] sm:$0xff]  ;;  %v547_v30 = vadd.f32 %v546_v59, %v545_v57  ;;  %v423_v43 = vsel %vm300_vm0, %v2603_v38, 0.0 }
  0x85   : > { %v600_v20 = vadd.f32 %v599_v4, %v598_v17  ;;  %v484_v50 = vmul.f32 %v2574_v51, %v2574_v51  ;;  %v2608_v0 = vmul.f32 0.03125, %v363_v1  ;;  %v611_v4 = vsel %vm300_vm0, %v486_v53, 0.0 }
  0x86   : > { %v549_v24 = vadd.f32 %v548_v16, %v547_v30  ;;  %v488_v16 = vmul.f32 %v2603_v38, %v2603_v38  ;;  %v299_v30 = vld [vmem:[%s1955_s24 + $0x1f8] sm:$0xff] }
  0x87   : > { %v609_v57 = vsel %vm300_vm0, %v484_v50, 0.0  ;;  %v621_v9 = vmul.f32 %v2608_v0, %v2608_v0 }
  0x88   : > { %1452 = vperm.xlu1 %1797, %v1764_v35   ;;  %1448 = vperm.xlu0 %1796, %v1763_v48   ;;  %v419_v35 = vsel %vm300_vm0, %v2574_v51, 0.0  ;;  %v551_v40 = vadd.f32 %v550_v49, %v549_v24  ;;  %v602_v48 = vadd.f32 %v601_v14, %v600_v20  ;;  %v425_v24 = vsel %vm300_vm0, %v299_v30, 0.0 }
  0x89   : > { %v420_v60 = vadd.f32 %v419_v35, %v418_v32  ;;  %v490_v20 = vmul.f32 %v299_v30, %v299_v30  ;;  %v613_v1 = vsel %vm300_vm0, %v488_v16, 0.0 }
  0x8a   : > { %v604_v46 = vadd.f32 %v603_v10, %v602_v48  ;;  %v553_v59 = vadd.f32 %v552_v37, %v551_v40 }
  0x8b   : > { %v615_v48 = vsel %vm300_vm0, %v490_v20, 0.0 }
  0x8c   : > { %1460 = vperm.xlu1 %1797, %v1766_v12   ;;  %1456 = vperm.xlu0 %1796, %v1765_v44   ;;  %v606_v6 = vadd.f32 %v605_v27, %v604_v46  ;;  %v422_v44 = vadd.f32 %v421_v62, %v420_v60  ;;  %v619_v58 = vmul.f32 0.03125, %v553_v59 }
  0x8e   : > { %v608_v13 = vadd.f32 %v607_v61, %v606_v6  ;;  %v424_v14 = vadd.f32 %v423_v43, %v422_v44  ;;  %v623_v35 = vsub.f32 %v619_v58, %v621_v9  ;;  %v753_v9 = vsub.f32 %v2499_v11, %v2608_v0 }
  0x8f   : > { %v2593_v15 = vpop.permute.xlu1 %992  ;;  %v2598_v52 = vpop.permute.xlu0 %984 }
  0x90   : > { %v610_v17 = vadd.f32 %v609_v57, %v608_v13  ;;  %v426_v40 = vadd.f32 %v425_v24, %v424_v14  ;;  %v625_v50 = vmax.f32 %v623_v35, 0.0 }
  0x92   : > { %v612_v32 = vadd.f32 %v611_v4, %v610_v17  ;;  %v2638_v46 = vmul.f32 0.03125, %v426_v40  ;;  %v627_v53 = vadd.f32 1e-05, %v625_v50 }
  0x93   : > { %v2611_v8 = vpop.permute.xlu1 %996  ;;  %v2613_v12 = vpop.permute.xlu0 %988 }
  0x94   : > { %v614_v37 = vadd.f32 %v613_v1, %v612_v32  ;;  %v622_v57 = vmul.f32 %v2638_v46, %v2638_v46  ;;  %1798 = vrsqrt.f32 %v627_v53  ;;  %v754_v50 = vsub.f32 %v2585_v22, %v2638_v46 }
  0x95   : > { %v752_v53 = vsub.f32 %v2574_v51, %v2638_v46  ;;  %v756_v22 = vsub.f32 %v2603_v38, %v2638_v46 }
  0x96   : > { %v616_v62 = vadd.f32 %v615_v48, %v614_v37 }
  0x97   : > { %v2623_v19 = vpop.permute.xlu1 %1004  ;;  %v2625_v49 = vpop.permute.xlu0 %1000 }
  0x98   : > { %v620_v6 = vmul.f32 0.03125, %v616_v62  ;;  %v751_v62 = vsub.f32 %v2471_v41, %v2608_v0 }
  0x9a   : > { %v624_v13 = vsub.f32 %v620_v6, %v622_v57  ;;  %v757_v6 = vsub.f32 %v2553_v2, %v2608_v0  ;;  %v758_v57 = vsub.f32 %v299_v30, %v2638_v46 }
  0x9b   : > { %v2629_v39 = vpop.permute.xlu1 %1012  ;;  %v2631_v10 = vpop.permute.xlu0 %1008 }
  0x9c   : > { %v626_v58 = vmax.f32 %v624_v13, 0.0  ;;  %v755_v13 = vsub.f32 %v2527_v21, %v2608_v0 }
  0x9e   : > { %v2656_v17 = vpop.eup %1798  ;;  %v628_v24 = vadd.f32 1e-05, %v626_v58 }
  0x9f   : > { %v2634_v27 = vpop.permute.xlu1 %1020  ;;  %v2636_v60 = vpop.permute.xlu0 %1016  ;;  %v2663_v20 = vmul.f32 %v2656_v17, %v753_v9  ;;  %v2700_v51 = vmul.f32 %v2656_v17, %v751_v62  ;;  %v2706_v30 = vmul.f32 %v2656_v17, %v757_v6 }
  0xa0   : > { %1800 = vrsqrt.f32 %v628_v24  ;;  %v2712_v24 = vmul.f32 %v2656_v17, %v755_v13 }
  0xa1   : > { %3139 = vst [vmem:[#allocation7_spill] sm:$0xff] %v2663_v20  ;;  %3147 = vst [vmem:[#allocation15_spill] sm:$0xff] %v2700_v51  ;;  %v1806_v51 = vld [vmem:[%s1955_s24 + $0x20] sm:$0xff] }
  0xa2   : > { %3149 = vst [vmem:[#allocation17_spill] sm:$0xff] %v2706_v30  ;;  %3151 = vst [vmem:[#allocation19_spill] sm:$0xff] %v2712_v24  ;;  %v1803_v30 = vld [vmem:[%s1955_s24 + $0x10] sm:$0xff]  ;;  %v1805_v24 = vld [vmem:[%s1955_s24 + $0x18] sm:$0xff] }
  0xa3   : > { %v2640_v59 = vpop.permute.xlu1 %1028  ;;  %v2642_v61 = vpop.permute.xlu0 %1024 }
  0xa7   : > { %v2646_v44 = vpop.permute.xlu1 %1036  ;;  %v2648_v43 = vpop.permute.xlu0 %1032 }
  0xaa   : > { %v2688_v58 = vpop.eup %1800 }
  0xab   : > { %v2650_v16 = vpop.permute.xlu1 %1044  ;;  %v2652_v4 = vpop.permute.xlu0 %1040  ;;  %v2697_v2 = vmul.f32 %v2688_v58, %v754_v50  ;;  %v2703_v21 = vmul.f32 %v2688_v58, %v752_v53  ;;  %v2709_v38 = vmul.f32 %v2688_v58, %v758_v57  ;;  %v2715_v20 = vmul.f32 %v2688_v58, %v756_v22  ;;  %v1802_v53 = vld [vmem:[%s1955_s24] sm:$0xff]  ;;  %v1804_v57 = vld [vmem:[%s1955_s24 + $0x8] sm:$0xff] }
  0xac   : > { %v695_v6 = vsub.f32 %v1802_v53, %v2608_v0  ;;  %v696_v13 = vsub.f32 %v1804_v57, %v2638_v46  ;;  %v698_v22 = vsub.f32 %v1805_v24, %v2638_v46 }
  0xad   : > { %3146 = vst [vmem:[#allocation14_spill] sm:$0xff] %v2697_v2  ;;  %3148 = vst [vmem:[#allocation16_spill] sm:$0xff] %v2703_v21  ;;  %v697_v21 = vsub.f32 %v1803_v30, %v2608_v0  ;;  %v699_v2 = vsub.f32 %v1806_v51, %v2608_v0  ;;  %v1807_v30 = vld [vmem:[%s1955_s24 + $0x30] sm:$0xff] }
  0xae   : > { %3150 = vst [vmem:[#allocation18_spill] sm:$0xff] %v2709_v38  ;;  %3152 = vst [vmem:[#allocation20_spill] sm:$0xff] %v2715_v20  ;;  %v759_v53 = vmul.f32 %v2656_v17, %v695_v6 }
  0xaf   : > { %v2658_v14 = vpop.permute.xlu1 %1052  ;;  %v2660_v32 = vpop.permute.xlu0 %1048  ;;  %v761_v57 = vmul.f32 %v2656_v17, %v697_v21 }
  0xb3   : > { %v2665_v1 = vpop.permute.xlu1 %1060  ;;  %v2667_v35 = vpop.permute.xlu0 %1056 }
  0xb7   : > { %v2669_v40 = vpop.permute.xlu1 %1068  ;;  %v2671_v37 = vpop.permute.xlu0 %1064 }
  0xb8   : > { %3140 = vst [vmem:[#allocation8_spill] sm:$0xff] %v2669_v40  ;;  %3141 = vst [vmem:[#allocation9_spill] sm:$0xff] %v2671_v37  ;;  %v1815_v37 = vld [vmem:[%s1955_s24 + $0x60] sm:$0xff] }
  0xbb   : > { %v2673_v11 = vpop.permute.xlu1 %1076  ;;  %v2675_v48 = vpop.permute.xlu0 %1072 }
  0xbc   : > { %3142 = vst [vmem:[#allocation10_spill] sm:$0xff] %v2673_v11  ;;  %3143 = vst [vmem:[#allocation11_spill] sm:$0xff] %v2675_v48  ;;  %v1810_v48 = vld [vmem:[%s1955_s24 + $0x50] sm:$0xff]  ;;  %v1811_v11 = vld [vmem:[%s1955_s24 + $0x58] sm:$0xff] }
  0xbd   : > { %v706_v21 = vsub.f32 %v1811_v11, %v2638_v46 }
  0xbf   : > { %v2692_v41 = vpop.permute.xlu1 %1084  ;;  %v2694_v9 = vpop.permute.xlu0 %1080 }
  0xc0   : > { %3144 = vst [vmem:[#allocation12_spill] sm:$0xff] %v2692_v41  ;;  %3145 = vst [vmem:[#allocation13_spill] sm:$0xff] %v2694_v9  ;;  %v1809_v9 = vld [vmem:[%s1955_s24 + $0x38] sm:$0xff]  ;;  %v762_v41 = vmul.f32 %v2688_v58, %v698_v22  ;;  %v763_v22 = vmul.f32 %v2656_v17, %v699_v2  ;;  %v710_v2 = vsub.f32 %v2068_v5, %v2638_v46 }
  0xc3   : > { %v2717_v50 = vpop.permute.xlu1 %1092  ;;  %v2719_v62 = vpop.permute.xlu0 %1088 }
  0xc4   : > { %3153 = vst [vmem:[#allocation21_spill] sm:$0xff] %v2717_v50  ;;  %3154 = vst [vmem:[#allocation22_spill] sm:$0xff] %v2719_v62  ;;  %v701_v62 = vsub.f32 %v1807_v30, %v2608_v0  ;;  %v1808_v50 = vld [vmem:[%s1955_s24 + $0x28] sm:$0xff]  ;;  %v705_v30 = vsub.f32 %v1810_v48, %v2608_v0  ;;  %v1113_v48 = vmul.f32 %v2613_v12, %v761_v57 }
  0xc5   : > { %v700_v24 = vsub.f32 %v1808_v50, %v2638_v46  ;;  %v1812_v50 = vld [vmem:[%s1955_s24 + $0x40] sm:$0xff] }
  0xc7   : > { %v2729_v20 = vpop.permute.xlu1 %1100  ;;  %v2731_v38 = vpop.permute.xlu0 %1096  ;;  %v764_v47 = vmul.f32 %v2688_v58, %v700_v24 }
  0xc8   : > { %3155 = vst [vmem:[#allocation23_spill] sm:$0xff] %v2729_v20  ;;  %3156 = vst [vmem:[#allocation24_spill] sm:$0xff] %v2731_v38  ;;  %v760_v20 = vmul.f32 %v2688_v58, %v696_v13  ;;  %v702_v38 = vsub.f32 %v1809_v9, %v2638_v46  ;;  %v703_v13 = vsub.f32 %v1812_v50, %v2608_v0 }
  0xc9   : > { %v704_v9 = vsub.f32 %v1813_v29, %v2638_v46  ;;  %v1114_v50 = vmul.f32 %v2613_v12, %v762_v41  ;;  %v709_v29 = vsub.f32 %v1814_v7, %v2608_v0 }
  0xca   : > { %v1112_v11 = vmul.f32 %v2598_v52, %v760_v20  ;;  %v766_v45 = vmul.f32 %v2688_v58, %v702_v38  ;;  %v769_v38 = vmul.f32 %v2656_v17, %v705_v30  ;;  %v767_v24 = vmul.f32 %v2656_v17, %v703_v13 }
  0xcb   : > { %v2745_v51 = vpop.permute.xlu1 %1108  ;;  %v2747_v6 = vpop.permute.xlu0 %1104 }
  0xcc   : > { %3157 = vst [vmem:[#allocation25_spill] sm:$0xff] %v2745_v51  ;;  %3158 = vst [vmem:[#allocation26_spill] sm:$0xff] %v2747_v6  ;;  %v1111_v6 = vmul.f32 %v2598_v52, %v759_v53  ;;  %v765_v51 = vmul.f32 %v2656_v17, %v701_v62  ;;  %v707_v53 = vsub.f32 %v1815_v37, %v2608_v0  ;;  %v1816_v62 = vld [vmem:[%s1955_s24 + $0x68] sm:$0xff] }
  0xcd   : > { %v708_v57 = vsub.f32 %v1816_v62, %v2638_v46  ;;  %v1115_v37 = vmul.f32 %v2593_v15, %v763_v22  ;;  %v1116_v62 = vmul.f32 %v2593_v15, %v764_v47  ;;  %v1118_v23 = vmul.f32 %v2611_v8, %v766_v45  ;;  %v1818_v15 = vld [vmem:[%s1955_s24 + $0x80] sm:$0xff] }
  0xce   : > { %v1117_v41 = vmul.f32 %v2611_v8, %v765_v51  ;;  %v1817_v51 = vld [vmem:[%s1955_s24 + $0x90] sm:$0xff]  ;;  %v714_v47 = vsub.f32 %v2102_v34, %v2638_v46  ;;  %v711_v45 = vsub.f32 %v1818_v15, %v2608_v0  ;;  %v1819_v8 = vld [vmem:[%s1955_s24 + $0x88] sm:$0xff]  ;;  %v1121_v34 = vmul.f32 %v2623_v19, %v769_v38 }
  0xcf   : > { %v1341_v40 = vpop.permute.xlu1 %1340  ;;  %v1337_v7 = vpop.permute.xlu0 %1336  ;;  %v712_v30 = vsub.f32 %v1819_v8, %v2638_v46 }
  0xd0   : > { %v1465_v52 = vadd.f32 %v1341_v40, %v1113_v48  ;;  %v1466_v5 = vadd.f32 %v1341_v40, %v1114_v50  ;;  %v1463_v12 = vadd.f32 %v1337_v7, %v1111_v6  ;;  %v1464_v20 = vadd.f32 %v1337_v7, %v1112_v11 }
  0xd1   : > { %v770_v48 = vmul.f32 %v2688_v58, %v706_v21  ;;  %v768_v40 = vmul.f32 %v2688_v58, %v704_v9  ;;  %v713_v6 = vsub.f32 %v1817_v51, %v2608_v0  ;;  %v1119_v7 = vmul.f32 %v2625_v49, %v767_v24 }
  0xd2   : > { %1529 = vst.msk [vmem:[%s2778_s20 + $0x10] sm:$0xff] %vm300_vm0, %v1465_v52  ;;  %1530 = vst.msk [vmem:[%s2778_s20 + $0x18] sm:$0xff] %vm300_vm0, %v1466_v5  ;;  %v773_v52 = vmul.f32 %v2656_v17, %v709_v29  ;;  %v771_v5 = vmul.f32 %v2656_v17, %v707_v53  ;;  %v1821_v53 = vld [vmem:[%s1955_s24 + $0xa0] sm:$0xff] }
  0xd3   : > { %1527 = vst.msk [vmem:[%s2778_s20] sm:$0xff] %vm300_vm0, %v1463_v12  ;;  %1528 = vst.msk [vmem:[%s2778_s20 + $0x8] sm:$0xff] %vm300_vm0, %v1464_v20  ;;  %v1349_v21 = vpop.permute.xlu1 %1348  ;;  %v1345_v13 = vpop.permute.xlu0 %1344  ;;  %v1122_v12 = vmul.f32 %v2623_v19, %v770_v48  ;;  %v1120_v20 = vmul.f32 %v2625_v49, %v768_v40  ;;  %v718_v19 = vsub.f32 %v2134_v54, %v2638_v46 }
  0xd4   : > { %v1469_v9 = vadd.f32 %v1349_v21, %v1117_v41  ;;  %v1470_v22 = vadd.f32 %v1349_v21, %v1118_v23  ;;  %v1467_v11 = vadd.f32 %v1345_v13, %v1115_v37  ;;  %v1468_v50 = vadd.f32 %v1345_v13, %v1116_v62  ;;  %v1820_v37 = vld [vmem:[%s1955_s24 + $0xb0] sm:$0xff] }
  0xd5   : > { %v774_v41 = vmul.f32 %v2688_v58, %v710_v2  ;;  %v772_v23 = vmul.f32 %v2688_v58, %v708_v57  ;;  %v717_v29 = vsub.f32 %v1820_v37, %v2608_v0  ;;  %v715_v49 = vsub.f32 %v1821_v53, %v2608_v0  ;;  %v1822_v2 = vld [vmem:[%s1955_s24 + $0xa8] sm:$0xff] }
  0xd6   : > { %1533 = vst.msk [vmem:[%s2778_s20 + $0x30] sm:$0xff] %vm300_vm0, %v1469_v9  ;;  %1534 = vst.msk [vmem:[%s2778_s20 + $0x38] sm:$0xff] %vm300_vm0, %v1470_v22  ;;  %v716_v57 = vsub.f32 %v1822_v2, %v2638_v46  ;;  %v1125_v54 = vmul.f32 %v2629_v39, %v773_v52  ;;  %v1123_v15 = vmul.f32 %v2631_v10, %v771_v5 }
  0xd7   : > { %1531 = vst.msk [vmem:[%s2778_s20 + $0x20] sm:$0xff] %vm300_vm0, %v1467_v11  ;;  %1532 = vst.msk [vmem:[%s2778_s20 + $0x28] sm:$0xff] %vm300_vm0, %v1468_v50  ;;  %v1357_v38 = vpop.permute.xlu1 %1356  ;;  %v1353_v24 = vpop.permute.xlu0 %1352  ;;  %v777_v8 = vmul.f32 %v2656_v17, %v713_v6  ;;  %v775_v21 = vmul.f32 %v2656_v17, %v711_v45  ;;  %v1126_v13 = vmul.f32 %v2629_v39, %v774_v41  ;;  %v1823_v6 = vld [vmem:[%s1955_s24 + $0xd0] sm:$0xff]  ;;  %v1824_v45 = vld [vmem:[%s1955_s24 + $0xd8] sm:$0xff] }
  0xd8   : > { %v1473_v62 = vadd.f32 %v1357_v38, %v1121_v34  ;;  %v1474_v48 = vadd.f32 %v1357_v38, %v1122_v12  ;;  %v1471_v40 = vadd.f32 %v1353_v24, %v1119_v7  ;;  %v1472_v51 = vadd.f32 %v1353_v24, %v1120_v20  ;;  %v1825_v34 = vld [vmem:[%s1955_s24 + $0xc0] sm:$0xff] }
  0xd9   : > { %v1124_v9 = vmul.f32 %v2631_v10, %v772_v23  ;;  %v778_v22 = vmul.f32 %v2688_v58, %v714_v47  ;;  %v776_v11 = vmul.f32 %v2688_v58, %v712_v30  ;;  %v721_v50 = vsub.f32 %v1823_v6, %v2608_v0  ;;  %v1826_v47 = vld [vmem:[%s1955_s24 + $0xc8] sm:$0xff] }
  0xda   : > { %1537 = vst.msk [vmem:[%s2778_s20 + $0x50] sm:$0xff] %vm300_vm0, %v1473_v62  ;;  %1538 = vst.msk [vmem:[%s2778_s20 + $0x58] sm:$0xff] %vm300_vm0, %v1474_v48  ;;  %v722_v39 = vsub.f32 %v1824_v45, %v2638_v46  ;;  %v719_v10 = vsub.f32 %v1825_v34, %v2608_v0  ;;  %v720_v30 = vsub.f32 %v1826_v47, %v2638_v46 }
  0xdb   : > { %1535 = vst.msk [vmem:[%s2778_s20 + $0x40] sm:$0xff] %vm300_vm0, %v1471_v40  ;;  %1536 = vst.msk [vmem:[%s2778_s20 + $0x48] sm:$0xff] %vm300_vm0, %v1472_v51  ;;  %v1365_v7 = vpop.permute.xlu1 %1364  ;;  %v1361_v52 = vpop.permute.xlu0 %1360  ;;  %v1129_v23 = vmul.f32 %v2634_v27, %v777_v8  ;;  %v1127_v37 = vmul.f32 %v2636_v60, %v775_v21  ;;  %v781_v53 = vmul.f32 %v2656_v17, %v717_v29  ;;  %v1827_v40 = vld [vmem:[%s1955_s24 + $0xf0] sm:$0xff] }
  0xdc   : > { %v1477_v5 = vadd.f32 %v1365_v7, %v1125_v54  ;;  %v1478_v12 = vadd.f32 %v1365_v7, %v1126_v13  ;;  %v1475_v20 = vadd.f32 %v1361_v52, %v1123_v15  ;;  %v1476_v41 = vadd.f32 %v1361_v52, %v1124_v9  ;;  %v1830_v7 = vld [vmem:[%s1955_s24 + $0x110] sm:$0xff] }
  0xdd   : > { %v779_v2 = vmul.f32 %v2656_v17, %v715_v49  ;;  %v1130_v38 = vmul.f32 %v2634_v27, %v778_v22  ;;  %v1128_v24 = vmul.f32 %v2636_v60, %v776_v11  ;;  %v782_v62 = vmul.f32 %v2688_v58, %v718_v19  ;;  %v1828_v49 = vld [vmem:[%s1955_s24 + $0xe0] sm:$0xff]  ;;  %v1829_v19 = vld [vmem:[%s1955_s24 + $0xe8] sm:$0xff] }
  0xde   : > { %v780_v48 = vmul.f32 %v2688_v58, %v716_v57  ;;  %1541 = vst.msk [vmem:[%s2778_s20 + $0x70] sm:$0xff] %vm300_vm0, %v1477_v5  ;;  %1542 = vst.msk [vmem:[%s2778_s20 + $0x78] sm:$0xff] %vm300_vm0, %v1478_v12  ;;  %v725_v29 = vsub.f32 %v1827_v40, %v2608_v0  ;;  %v726_v27 = vsub.f32 %v2214_v56, %v2638_v46  ;;  %v1833_v40 = vld [vmem:[%s1955_s24 + $0x130] sm:$0xff] }
  0xdf   : > { %1539 = vst.msk [vmem:[%s2778_s20 + $0x60] sm:$0xff] %vm300_vm0, %v1475_v20  ;;  %1540 = vst.msk [vmem:[%s2778_s20 + $0x68] sm:$0xff] %vm300_vm0, %v1476_v41  ;;  %v723_v60 = vsub.f32 %v1828_v49, %v2608_v0  ;;  %v724_v57 = vsub.f32 %v1829_v19, %v2638_v46  ;;  %v1373_v51 = vpop.permute.xlu1 %1372  ;;  %v1369_v54 = vpop.permute.xlu0 %1368  ;;  %v1133_v56 = vmul.f32 %v2640_v59, %v781_v53  ;;  %v1834_v49 = vld [vmem:[%s1955_s24 + $0x120] sm:$0xff] }
  0xe0   : > { %v1481_v15 = vadd.f32 %v1373_v51, %v1129_v23  ;;  %v1482_v8 = vadd.f32 %v1373_v51, %v1130_v38  ;;  %v1479_v21 = vadd.f32 %v1369_v54, %v1127_v37  ;;  %v1480_v13 = vadd.f32 %v1369_v54, %v1128_v24 }
  0xe1   : > { %v1131_v9 = vmul.f32 %v2642_v61, %v779_v2  ;;  %v785_v22 = vmul.f32 %v2656_v17, %v721_v50  ;;  %v783_v11 = vmul.f32 %v2656_v17, %v719_v10  ;;  %v1134_v6 = vmul.f32 %v2640_v59, %v782_v62  ;;  %v1831_v10 = vld [vmem:[%s1955_s24 + $0x100] sm:$0xff] }
  0xe2   : > { %v1132_v45 = vmul.f32 %v2642_v61, %v780_v48  ;;  %v786_v34 = vmul.f32 %v2688_v58, %v722_v39  ;;  %v784_v47 = vmul.f32 %v2688_v58, %v720_v30  ;;  %1545 = vst.msk [vmem:[%s2778_s20 + $0x90] sm:$0xff] %vm300_vm0, %v1481_v15  ;;  %1546 = vst.msk [vmem:[%s2778_s20 + $0x98] sm:$0xff] %vm300_vm0, %v1482_v8  ;;  %v1832_v39 = vld [vmem:[%s1955_s24 + $0x108] sm:$0xff] }
  0xe3   : > { %1543 = vst.msk [vmem:[%s2778_s20 + $0x80] sm:$0xff] %vm300_vm0, %v1479_v21  ;;  %1544 = vst.msk [vmem:[%s2778_s20 + $0x88] sm:$0xff] %vm300_vm0, %v1480_v13  ;;  %v729_v50 = vsub.f32 %v1830_v7, %v2608_v0  ;;  %v730_v59 = vsub.f32 %v2263_v55, %v2638_v46  ;;  %v727_v61 = vsub.f32 %v1831_v10, %v2608_v0  ;;  %v1381_v52 = vpop.permute.xlu1 %1380  ;;  %v1377_v5 = vpop.permute.xlu0 %1376 }
  0xe4   : > { %v728_v30 = vsub.f32 %v1832_v39, %v2638_v46  ;;  %v1485_v12 = vadd.f32 %v1381_v52, %v1133_v56  ;;  %v1486_v20 = vadd.f32 %v1381_v52, %v1134_v6  ;;  %v1483_v41 = vadd.f32 %v1377_v5, %v1131_v9 }
  0xe5   : > { %v1484_v23 = vadd.f32 %v1377_v5, %v1132_v45  ;;  %v1137_v55 = vmul.f32 %v2646_v44, %v785_v22  ;;  %v1135_v37 = vmul.f32 %v2648_v43, %v783_v11  ;;  %v789_v53 = vmul.f32 %v2656_v17, %v725_v29  ;;  %v1835_v11 = vld [vmem:[%s1955_s24 + $0x150] sm:$0xff]  ;;  %v1836_v45 = vld [vmem:[%s1955_s24 + $0x140] sm:$0xff] }
  0xe6   : > { %v787_v2 = vmul.f32 %v2656_v17, %v723_v60  ;;  %v1138_v38 = vmul.f32 %v2646_v44, %v786_v34  ;;  %v1136_v24 = vmul.f32 %v2648_v43, %v784_v47  ;;  %v790_v62 = vmul.f32 %v2688_v58, %v726_v27  ;;  %1549 = vst.msk [vmem:[%s2778_s20 + $0xb0] sm:$0xff] %vm300_vm0, %v1485_v12 }
  0xe7   : > { %v788_v48 = vmul.f32 %v2688_v58, %v724_v57  ;;  %1550 = vst.msk [vmem:[%s2778_s20 + $0xb8] sm:$0xff] %vm300_vm0, %v1486_v20  ;;  %1547 = vst.msk [vmem:[%s2778_s20 + $0xa0] sm:$0xff] %vm300_vm0, %v1483_v41  ;;  %v733_v29 = vsub.f32 %v1833_v40, %v2608_v0  ;;  %v734_v44 = vsub.f32 %v2320_v31, %v2638_v46  ;;  %v1389_v60 = vpop.permute.xlu1 %1388  ;;  %v1385_v19 = vpop.permute.xlu0 %1384 }
  0xe8   : > { %1548 = vst.msk [vmem:[%s2778_s20 + $0xa8] sm:$0xff] %vm300_vm0, %v1484_v23  ;;  %v731_v43 = vsub.f32 %v1834_v49, %v2608_v0  ;;  %v732_v27 = vsub.f32 %v2292_v63, %v2638_v46  ;;  %v1489_v57 = vadd.f32 %v1389_v60, %v1137_v55  ;;  %v1490_v51 = vadd.f32 %v1389_v60, %v1138_v38  ;;  %v1837_v23 = vld [vmem:[%s1955_s24 + $0x160] sm:$0xff] }
  0xe9   : > { %v1487_v54 = vadd.f32 %v1385_v19, %v1135_v37  ;;  %v1488_v15 = vadd.f32 %v1385_v19, %v1136_v24  ;;  %v1141_v31 = vmul.f32 %v2650_v16, %v789_v53  ;;  %v1139_v8 = vmul.f32 %v2652_v4, %v787_v2 }
  0xea   : > { %v793_v21 = vmul.f32 %v2656_v17, %v729_v50  ;;  %v791_v13 = vmul.f32 %v2656_v17, %v727_v61  ;;  %v1142_v63 = vmul.f32 %v2650_v16, %v790_v62  ;;  %v1140_v56 = vmul.f32 %v2652_v4, %v788_v48  ;;  %1553 = vst.msk [vmem:[%s2778_s20 + $0xd0] sm:$0xff] %vm300_vm0, %v1489_v57 }
  0xeb   : > { %v794_v9 = vmul.f32 %v2688_v58, %v730_v59  ;;  %v792_v22 = vmul.f32 %v2688_v58, %v728_v30  ;;  %1554 = vst.msk [vmem:[%s2778_s20 + $0xd8] sm:$0xff] %vm300_vm0, %v1490_v51  ;;  %1551 = vst.msk [vmem:[%s2778_s20 + $0xc0] sm:$0xff] %vm300_vm0, %v1487_v54  ;;  %v737_v6 = vsub.f32 %v1835_v11, %v2608_v0  ;;  %v1397_v47 = vpop.permute.xlu1 %1396  ;;  %v1393_v7 = vpop.permute.xlu0 %1392  ;;  %v3162_v11 = vld [vmem:[#allocation3_spill] sm:$0xff] }
  0xec   : > { %1552 = vst.msk [vmem:[%s2778_s20 + $0xc8] sm:$0xff] %vm300_vm0, %v1488_v15  ;;  %v738_v16 = vsub.f32 %v2376_v25, %v2638_v46  ;;  %v735_v4 = vsub.f32 %v1836_v45, %v2608_v0  ;;  %v736_v34 = vsub.f32 %v2348_v28, %v2638_v46  ;;  %v1493_v50 = vadd.f32 %v1397_v47, %v1141_v31 }
  0xed   : > { %v1494_v59 = vadd.f32 %v1397_v47, %v1142_v63  ;;  %v1491_v10 = vadd.f32 %v1393_v7, %v1139_v8  ;;  %v1492_v61 = vadd.f32 %v1393_v7, %v1140_v56  ;;  %v1145_v39 = vmul.f32 %v2658_v14, %v793_v21  ;;  %v3165_v47 = vld [vmem:[#allocation5_spill] sm:$0xff] }
  0xee   : > { %v1143_v25 = vmul.f32 %v2660_v32, %v791_v13  ;;  %v797_v30 = vmul.f32 %v2656_v17, %v733_v29  ;;  %v795_v52 = vmul.f32 %v2656_v17, %v731_v43  ;;  %v1146_v28 = vmul.f32 %v2658_v14, %v794_v9  ;;  %1557 = vst.msk [vmem:[%s2778_s20 + $0xf0] sm:$0xff] %vm300_vm0, %v1493_v50  ;;  %v3161_v13 = vld [vmem:[#allocation9_spill] sm:$0xff] }
  0xef   : > { %v1144_v5 = vmul.f32 %v2660_v32, %v792_v22  ;;  %v798_v12 = vmul.f32 %v2688_v58, %v734_v44  ;;  %v796_v20 = vmul.f32 %v2688_v58, %v732_v27  ;;  %1558 = vst.msk [vmem:[%s2778_s20 + $0xf8] sm:$0xff] %vm300_vm0, %v1494_v59  ;;  %1555 = vst.msk [vmem:[%s2778_s20 + $0xe0] sm:$0xff] %vm300_vm0, %v1491_v10  ;;  %v1405_v37 = vpop.permute.xlu1 %1404  ;;  %v1401_v53 = vpop.permute.xlu0 %1400 }
  0xf0   : > { %1556 = vst.msk [vmem:[%s2778_s20 + $0xe8] sm:$0xff] %vm300_vm0, %v1492_v61  ;;  %v741_v41 = vsub.f32 %v2331_v42, %v2608_v0  ;;  %v742_v14 = vsub.f32 %v2432_v36, %v2638_v46  ;;  %v739_v32 = vsub.f32 %v1837_v23, %v2608_v0  ;;  %v740_v55 = vsub.f32 %v2404_v26, %v2638_v46 }
  0xf1   : > { %v1497_v2 = vadd.f32 %v1405_v37, %v1145_v39  ;;  %v1498_v38 = vadd.f32 %v1405_v37, %v1146_v28  ;;  %v1495_v24 = vadd.f32 %v1401_v53, %v1143_v25  ;;  %v1496_v62 = vadd.f32 %v1401_v53, %v1144_v5  ;;  %v3167_v28 = vld [vmem:[#allocation11_spill] sm:$0xff] }
  0xf2   : > { %v1149_v42 = vmul.f32 %v2665_v1, %v797_v30  ;;  %v801_v36 = vmul.f32 %v2656_v17, %v737_v6  ;;  %v802_v48 = vmul.f32 %v2688_v58, %v738_v16  ;;  %v799_v40 = vmul.f32 %v2656_v17, %v735_v4  ;;  %v3163_v16 = vld [vmem:[#allocation6_spill] sm:$0xff] }
  0xf3   : > { %v1150_v29 = vmul.f32 %v2665_v1, %v798_v12  ;;  %v1147_v26 = vmul.f32 %v2667_v35, %v795_v52  ;;  %v1148_v44 = vmul.f32 %v2667_v35, %v796_v20  ;;  %v800_v49 = vmul.f32 %v2688_v58, %v736_v34  ;;  %1561 = vst.msk [vmem:[%s2778_s20 + $0x110] sm:$0xff] %vm300_vm0, %v1497_v2  ;;  %v3159_v35 = vld [vmem:[#allocation4_spill] sm:$0xff]  ;;  %v1413_v19 = vpop.permute.xlu1 %1412  ;;  %v1409_v57 = vpop.permute.xlu0 %1408  ;;  %v3164_v4 = vld [vmem:[#allocation2_spill] sm:$0xff] }
  0xf4   : > { %1562 = vst.msk [vmem:[%s2778_s20 + $0x118] sm:$0xff] %vm300_vm0, %v1498_v38  ;;  %1559 = vst.msk [vmem:[%s2778_s20 + $0x100] sm:$0xff] %vm300_vm0, %v1495_v24  ;;  %v745_v43 = vsub.f32 %v2387_v18, %v2608_v0  ;;  %v746_v1 = vsub.f32 %v2488_v33, %v2638_v46  ;;  %v743_v27 = vsub.f32 %v2359_v3, %v2608_v0  ;;  %v3160_v18 = vld [vmem:[#allocation8_spill] sm:$0xff]  ;;  %v3166_v30 = vld [vmem:[#allocation10_spill] sm:$0xff] }
  0xf5   : > { %1560 = vst.msk [vmem:[%s2778_s20 + $0x108] sm:$0xff] %vm300_vm0, %v1496_v62  ;;  %v744_v60 = vsub.f32 %v3159_v35, %v2638_v46  ;;  %v1501_v51 = vadd.f32 %v1413_v19, %v1149_v42  ;;  %v1502_v54 = vadd.f32 %v1413_v19, %v1150_v29  ;;  %v1499_v15 = vadd.f32 %v1409_v57, %v1147_v26  ;;  %v3169_v29 = vld [vmem:[#allocation13_spill] sm:$0xff] }
  0xf6   : > { %v1500_v31 = vadd.f32 %v1409_v57, %v1148_v44  ;;  %v1153_v8 = vmul.f32 %v3160_v18, %v801_v36  ;;  %v1154_v33 = vmul.f32 %v3160_v18, %v802_v48  ;;  %v805_v21 = vmul.f32 %v2656_v17, %v741_v41  ;;  %v3168_v36 = vld [vmem:[#allocation12_spill] sm:$0xff]  ;;  %v3170_v35 = vld [vmem:[#allocation21_spill] sm:$0xff]  ;;  %v3171_v57 = vld [vmem:[#allocation22_spill] sm:$0xff] }
  0xf7   : > { %v803_v3 = vmul.f32 %v2656_v17, %v739_v32  ;;  %v1151_v63 = vmul.f32 %v3161_v13, %v799_v40  ;;  %v1152_v56 = vmul.f32 %v3161_v13, %v800_v49  ;;  %v806_v9 = vmul.f32 %v2688_v58, %v742_v14  ;;  %1565 = vst.msk [vmem:[%s2778_s20 + $0x130] sm:$0xff] %vm300_vm0, %v1501_v51  ;;  %v1421_v50 = vpop.permute.xlu1 %1420  ;;  %v1417_v59 = vpop.permute.xlu0 %1416  ;;  %v3173_v13 = vld [vmem:[#allocation23_spill] sm:$0xff] }
  0xf8   : > { %v804_v22 = vmul.f32 %v2688_v58, %v740_v55  ;;  %1566 = vst.msk [vmem:[%s2778_s20 + $0x138] sm:$0xff] %vm300_vm0, %v1502_v54  ;;  %1563 = vst.msk [vmem:[%s2778_s20 + $0x120] sm:$0xff] %vm300_vm0, %v1499_v15  ;;  %v749_v6 = vsub.f32 %v3162_v11, %v2608_v0  ;;  %v750_v45 = vsub.f32 %v3163_v16, %v2638_v46  ;;  %v3176_v11 = vld [vmem:[#allocation24_spill] sm:$0xff] }
  0xf9   : > { %1564 = vst.msk [vmem:[%s2778_s20 + $0x128] sm:$0xff] %vm300_vm0, %v1500_v31  ;;  %v747_v34 = vsub.f32 %v3164_v4, %v2608_v0  ;;  %v748_v7 = vsub.f32 %v3165_v47, %v2638_v46  ;;  %v1505_v10 = vadd.f32 %v1421_v50, %v1153_v8  ;;  %v1506_v61 = vadd.f32 %v1421_v50, %v1154_v33  ;;  %v3177_v16 = vld [vmem:[#allocation16_spill] sm:$0xff] }
  0xfa   : > { %v1503_v39 = vadd.f32 %v1417_v59, %v1151_v63  ;;  %v1504_v25 = vadd.f32 %v1417_v59, %v1152_v56  ;;  %v1157_v52 = vmul.f32 %v3166_v30, %v805_v21  ;;  %v1155_v5 = vmul.f32 %v3167_v28, %v803_v3  ;;  %v3172_v3 = vld [vmem:[#allocation7_spill] sm:$0xff]  ;;  %v3174_v56 = vld [vmem:[#allocation14_spill] sm:$0xff] }
  0xfb   : > { %v809_v12 = vmul.f32 %v2656_v17, %v745_v43  ;;  %v807_v0 = vmul.f32 %v2656_v17, %v743_v27  ;;  %v1158_v20 = vmul.f32 %v3166_v30, %v806_v9  ;;  %v1156_v46 = vmul.f32 %v3167_v28, %v804_v22  ;;  %1569 = vst.msk [vmem:[%s2778_s20 + $0x150] sm:$0xff] %vm300_vm0, %v1505_v10  ;;  %v1429_v23 = vpop.permute.xlu1 %1428  ;;  %v1425_v32 = vpop.permute.xlu0 %1424  ;;  %v3175_v22 = vld [vmem:[#allocation15_spill] sm:$0xff]  ;;  %v3178_v10 = vld [vmem:[#allocation17_spill] sm:$0xff]  ;;  %v3182_v28 = vld [vmem:[#allocation26_spill] sm:$0xff] }
  0xfc   : > { %v810_v41 = vmul.f32 %v2688_v58, %v746_v1  ;;  %v808_v14 = vmul.f32 %v2688_v58, %v744_v60  ;;  %1570 = vst.msk [vmem:[%s2778_s20 + $0x158] sm:$0xff] %vm300_vm0, %v1506_v61  ;;  %1567 = vst.msk [vmem:[%s2778_s20 + $0x140] sm:$0xff] %vm300_vm0, %v1503_v39  ;;  %v1509_v55 = vadd.f32 %v1429_v23, %v1157_v52  ;;  %v3179_v61 = vld [vmem:[#allocation25_spill] sm:$0xff]  ;;  %v3181_v52 = vld [vmem:[#allocation19_spill] sm:$0xff] }
  0xfd   : > { %1568 = vst.msk [vmem:[%s2778_s20 + $0x148] sm:$0xff] %vm300_vm0, %v1504_v25  ;;  %v1510_v37 = vadd.f32 %v1429_v23, %v1158_v20  ;;  %v1507_v53 = vadd.f32 %v1425_v32, %v1155_v5  ;;  %v1508_v2 = vadd.f32 %v1425_v32, %v1156_v46  ;;  %v813_v38 = vmul.f32 %v2656_v17, %v749_v6  ;;  %v3180_v25 = vld [vmem:[#allocation18_spill] sm:$0xff] }
  0xfe   : > { %v814_v24 = vmul.f32 %v2688_v58, %v750_v45  ;;  %v811_v62 = vmul.f32 %v2656_v17, %v747_v34  ;;  %v812_v42 = vmul.f32 %v2688_v58, %v748_v7  ;;  %v1161_v48 = vmul.f32 %v3168_v36, %v809_v12  ;;  %1573 = vst.msk [vmem:[%s2778_s20 + $0x170] sm:$0xff] %vm300_vm0, %v1509_v55  ;;  %v3183_v12 = vld [vmem:[#allocation20_spill] sm:$0xff] }
  0xff   : > { %v1162_v40 = vmul.f32 %v3168_v36, %v810_v41  ;;  %v1159_v26 = vmul.f32 %v3169_v29, %v807_v0  ;;  %v1160_v44 = vmul.f32 %v3169_v29, %v808_v14  ;;  %1574 = vst.msk [vmem:[%s2778_s20 + $0x178] sm:$0xff] %vm300_vm0, %v1510_v37  ;;  %1571 = vst.msk [vmem:[%s2778_s20 + $0x160] sm:$0xff] %vm300_vm0, %v1507_v53  ;;  %v1437_v17 = vpop.permute.xlu1 %1436  ;;  %v1433_v58 = vpop.permute.xlu0 %1432 }
 0x100   : > { %1572 = vst.msk [vmem:[%s2778_s20 + $0x168] sm:$0xff] %vm300_vm0, %v1508_v2  ;;  %v1513_v49 = vadd.f32 %v1437_v17, %v1161_v48  ;;  %v1165_v60 = vmul.f32 %v3170_v35, %v813_v38  ;;  %v1166_v19 = vmul.f32 %v3170_v35, %v814_v24  ;;  %v1163_v51 = vmul.f32 %v3171_v57, %v811_v62 }
 0x101   : > { %v1514_v43 = vadd.f32 %v1437_v17, %v1162_v40  ;;  %v1511_v1 = vadd.f32 %v1433_v58, %v1159_v26  ;;  %v1512_v27 = vadd.f32 %v1433_v58, %v1160_v44  ;;  %v1164_v54 = vmul.f32 %v3171_v57, %v812_v42 }
 0x102   : > { %1577 = vst.msk [vmem:[%s2778_s20 + $0x190] sm:$0xff] %vm300_vm0, %v1513_v49  ;;  %v1169_v63 = vmul.f32 %v3173_v13, %v3172_v3  ;;  %v1170_v9 = vmul.f32 %v3173_v13, %v3174_v56  ;;  %v1167_v6 = vmul.f32 %v3176_v11, %v3175_v22  ;;  %v1168_v45 = vmul.f32 %v3176_v11, %v3177_v16 }
 0x103   : > { %1578 = vst.msk [vmem:[%s2778_s20 + $0x198] sm:$0xff] %vm300_vm0, %v1514_v43  ;;  %1575 = vst.msk [vmem:[%s2778_s20 + $0x180] sm:$0xff] %vm300_vm0, %v1511_v1  ;;  %v1445_v15 = vpop.permute.xlu1 %1444  ;;  %v1441_v31 = vpop.permute.xlu0 %1440  ;;  %v1173_v39 = vmul.f32 %v3179_v61, %v3178_v10  ;;  %v1174_v30 = vmul.f32 %v3179_v61, %v3180_v25  ;;  %v1171_v5 = vmul.f32 %v3182_v28, %v3181_v52 }
 0x104   : > { %1576 = vst.msk [vmem:[%s2778_s20 + $0x188] sm:$0xff] %vm300_vm0, %v1512_v27  ;;  %v1517_v18 = vadd.f32 %v1445_v15, %v1165_v60  ;;  %v1518_v8 = vadd.f32 %v1445_v15, %v1166_v19  ;;  %v1515_v33 = vadd.f32 %v1441_v31, %v1163_v51  ;;  %v1516_v21 = vadd.f32 %v1441_v31, %v1164_v54 }
 0x105   : > { %v1172_v0 = vmul.f32 %v3182_v28, %v3183_v12 }
 0x106   : > { %1581 = vst.msk [vmem:[%s2778_s20 + $0x1b0] sm:$0xff] %vm300_vm0, %v1517_v18  ;;  %1582 = vst.msk [vmem:[%s2778_s20 + $0x1b8] sm:$0xff] %vm300_vm0, %v1518_v8 }
 0x107   : > { %1579 = vst.msk [vmem:[%s2778_s20 + $0x1a0] sm:$0xff] %vm300_vm0, %v1515_v33  ;;  %1580 = vst.msk [vmem:[%s2778_s20 + $0x1a8] sm:$0xff] %vm300_vm0, %v1516_v21  ;;  %v1453_v4 = vpop.permute.xlu1 %1452  ;;  %v1449_v34 = vpop.permute.xlu0 %1448 }
 0x108   : > { %v1521_v47 = vadd.f32 %v1453_v4, %v1169_v63  ;;  %v1522_v7 = vadd.f32 %v1453_v4, %v1170_v9  ;;  %v1519_v50 = vadd.f32 %v1449_v34, %v1167_v6  ;;  %v1520_v59 = vadd.f32 %v1449_v34, %v1168_v45 }
 0x10a   : > { %1585 = vst.msk [vmem:[%s2778_s20 + $0x1d0] sm:$0xff] %vm300_vm0, %v1521_v47  ;;  %1586 = vst.msk [vmem:[%s2778_s20 + $0x1d8] sm:$0xff] %vm300_vm0, %v1522_v7 }
 0x10b   : > { %1583 = vst.msk [vmem:[%s2778_s20 + $0x1c0] sm:$0xff] %vm300_vm0, %v1519_v50  ;;  %1584 = vst.msk [vmem:[%s2778_s20 + $0x1c8] sm:$0xff] %vm300_vm0, %v1520_v59  ;;  %v1461_v20 = vpop.permute.xlu1 %1460  ;;  %v1457_v46 = vpop.permute.xlu0 %1456 }
 0x10c   : > { %v1525_v41 = vadd.f32 %v1461_v20, %v1173_v39  ;;  %v1526_v14 = vadd.f32 %v1461_v20, %v1174_v30  ;;  %v1523_v23 = vadd.f32 %v1457_v46, %v1171_v5  ;;  %v1524_v32 = vadd.f32 %v1457_v46, %v1172_v0 }
 0x10e   : > { %1589 = vst.msk [vmem:[%s2778_s20 + $0x1f0] sm:$0xff] %vm300_vm0, %v1525_v41  ;;  %1590 = vst.msk [vmem:[%s2778_s20 + $0x1f8] sm:$0xff] %vm300_vm0, %v1526_v14 }
 0x10f   : > { %1587 = vst.msk [vmem:[%s2778_s20 + $0x1e0] sm:$0xff] %vm300_vm0, %v1523_v23  ;;  %1588 = vst.msk [vmem:[%s2778_s20 + $0x1e8] sm:$0xff] %vm300_vm0, %v1524_v32 }
 0x110 PF: > { %s13_s14 = sadd.s32 1, %s1860_s14   ;;  %s3184_s12 = smov %s1856_s13 }
 0x111   : > { %p10_p5 = scmp.ge.s32.totalorder %s13_s14, 4   ;;  %s3185_s13 = smov %s3187_s15 }
 0x113   :  { %12 = sbr.rel (!%p10_p5) target bundleno = 2 (0x2), region = 62 }

</bundles_post_ra>
